<compile_context>
chip_gen: v7x
topology: tpu7x:2x2x1
jax: 0.10.0
libtpu: 0.0.40
codegen_flags: <defaults>
</compile_context>

<pallas_src>
import jax
import jax.numpy as jnp
from jax import lax
from jax.experimental import pallas as pl
from jax.experimental.pallas import tpu as pltpu

K = 5          # Conv1d kernel_size
PAD = 2        # Conv1d padding
BN_EPS = 1e-5  # nn.BatchNorm1d default eps
LANE = 128


def _cnn_kernel(x_ref, len_ref, w_ref, bias_ref, scale_ref, shift_ref, o_ref):
    # x_ref     : (Bt, L, C_in)        bf16  (x transposed: channels on lanes)
    # len_ref   : (Bt, 1)              f32   (per-row mask sum == sequence length)
    # w_ref     : (K, C_in, C_out_pad) bf16  (w[k, c, o] = conv_w[o, c, k], o zero-padded)
    # bias_ref / scale_ref / shift_ref : (1, C_out_pad) f32
    # o_ref     : (Bt, C_out_pad)      f32
    x = x_ref[...]                                        # bf16
    lens = len_ref[...]                                   # (Bt, 1) f32
    _, L, _ = x.shape

    # Positions along L, laid out (L, 1) so they vary along sublanes like x's L axis.
    pos = lax.broadcasted_iota(jnp.int32, (L, 1), 0).astype(jnp.float32)
    len_b = lens[:, :, None]                              # (Bt, 1, 1)

    # Conv bias folded through the length-sum: bias[o] * sum_l(mask) = bias[o] * len.
    pre = lens * bias_ref[...]                            # (Bt, C_out_pad) f32

    # K taps, statically unrolled.  For tap k (shift s = k - PAD):
    #   tap_k[b, c] = sum_l mask[b, l - s] * x[b, l, c]
    # For a 0/1 prefix length-mask this is the window max(s,0) <= l < min(len+s, L+min(s,0)).
    for k in range(K):
        s = k - PAD
        lo = float(max(s, 0))
        hi = float(L + min(s, 0))
        valid = (pos >= lo) & (pos < jnp.minimum(len_b + float(s), hi))   # (Bt, L, 1)
        masked = jnp.where(valid, x, jnp.zeros_like(x))                   # bf16 select (VPU)
        tap = jnp.sum(masked.astype(jnp.float32), axis=1)                 # (Bt, C_in) f32 accumulate
        # One small MXU matmul per tap (C_out is tiny; MXU is essentially free here).
        pre += jnp.dot(tap.astype(jnp.bfloat16), w_ref[k],
                       preferred_element_type=jnp.float32)                # (Bt, C_out_pad)

    # BatchNorm1d (eval stats, pre-folded) + Dropout (identity in eval) + tanh.
    o_ref[...] = jnp.tanh(pre * scale_ref[...] + shift_ref[...])


def _round_up(n, m):
    return ((n + m - 1) // m) * m


def _vmem_tile_bytes(rows, cols, itemsize):
    # VMEM stores the last two dims in (8 * (4 // itemsize), 128) tiles.
    sub = 8 * (4 // itemsize)
    return _round_up(max(rows, 1), sub) * _round_up(max(cols, 1), LANE) * itemsize


def _vmem_capacity_bytes():
    try:
        cap = getattr(pltpu.get_tpu_info(), "vmem_capacity_bytes", None)
        if cap:
            return int(cap)
    except Exception:
        pass
    return 64 * 1024 * 1024        # v7x has the smallest VMEM; safe fallback


def _choose_bt(B, L, C_in, C_out_pad, vmem_limit):
    # Honest per-batch-row VMEM accounting: bf16 sublane packing, 128-lane padding,
    # the pipeline's double buffers and ~2 live f32 per-tap temporaries.
    xb = _vmem_tile_bytes(L, C_in, 2)       # streamed x block (bf16), per row
    xf = _vmem_tile_bytes(L, C_in, 4)       # per-tap f32 upcast temporary, per row
    small = (_round_up(C_in, LANE) + 3 * C_out_pad + 2 * LANE) * 4
    per_row = 2 * xb + 2 * xf + small
    fixed = 2 * K * _vmem_tile_bytes(C_in, C_out_pad, 2) + 8 * C_out_pad * 4 + (1 << 20)
    budget = int(0.45 * vmem_limit) - fixed
    bt = budget // per_row if per_row > 0 else 8
    # Bt=8 is the sublane-aligned floor; the 0.75*capacity limit leaves headroom if
    # even Bt=8 overshoots the 45% budget (only for C_in*L far beyond this module).
    bt = max(8, min(1024, (bt // 8) * 8))
    b8 = _round_up(B, 8)
    bt = min(bt, b8)
    # Keep several grid steps when the batch allows: DMA/compute overlap + both v7x TCs.
    target_steps = 4 if b8 >= 32 else 2
    if b8 // bt < target_steps and b8 >= target_steps * 8:
        bt = _round_up(-(-b8 // target_steps), 8)
    return bt


def cnn_net_forward(x, conv_len_mask, weight, bias, gamma, beta,
                    running_mean, running_var):
    """x: (B, C_in, L) f32, conv_len_mask: (B, 1, L) 0/1 length mask, weight: (C_out, C_in, K)."""
    B, C_in, L = x.shape
    C_out = weight.shape[0]
    C_out_pad = _round_up(C_out, LANE)

    # Per-row sequence length (== sum of the 0/1 length mask).  The kernel rebuilds the
    # K shifted conv-tap masks from it with iota compares, so no (B,K,L) mask hits HBM.
    # TODO(synk): a general (non prefix-length) mask would need to be streamed and
    # shifted in-kernel instead of being reduced to a length here.
    lens = jnp.sum(conv_len_mask.reshape(B, L).astype(jnp.float32), axis=-1, keepdims=True)

    # Lane-dense x: channels (>= L for this module) on the 128-lane axis, streamed bf16.
    x_t = jnp.transpose(x, (0, 2, 1)).astype(jnp.bfloat16)          # (B, L, C_in)

    # Conv weight as (K, C_in, C_out_pad) so w_ref[k] is a free leading-axis slice.
    w_t = jnp.transpose(weight.astype(jnp.float32), (2, 1, 0))      # (K, C_in, C_out)
    w_t = jnp.pad(w_t, ((0, 0), (0, 0), (0, C_out_pad - C_out))).astype(jnp.bfloat16)

    # BatchNorm folded to scale/shift; all per-channel rows zero-padded to lane width.
    scale_v = gamma.astype(jnp.float32) * lax.rsqrt(running_var.astype(jnp.float32) + BN_EPS)
    shift_v = beta.astype(jnp.float32) - running_mean.astype(jnp.float32) * scale_v

    def _row(v):
        return jnp.pad(v.astype(jnp.float32), (0, C_out_pad - C_out)).reshape(1, C_out_pad)

    bias_row, scale_row, shift_row = _row(bias), _row(scale_v), _row(shift_v)

    vmem_cap = _vmem_capacity_bytes()
    vmem_limit = int(0.75 * vmem_cap)    # ~96 MiB on v5e/v6e (128 MiB), ~48 MiB on v7x (64 MiB)
    Bt = _choose_bt(B, L, C_in, C_out_pad, vmem_limit)
    B_pad = _round_up(B, Bt)
    if B_pad != B:
        x_t = jnp.pad(x_t, ((0, B_pad - B), (0, 0), (0, 0)))
        lens = jnp.pad(lens, ((0, B_pad - B), (0, 0)))
    grid = (B_pad // Bt,)

    out = pl.pallas_call(
        _cnn_kernel,
        out_shape=jax.ShapeDtypeStruct((B_pad, C_out_pad), jnp.float32),
        grid_spec=pltpu.PrefetchScalarGridSpec(
            num_scalar_prefetch=0,
            grid=grid,
            in_specs=[
                pl.BlockSpec((Bt, L, C_in), lambda i: (i, 0, 0)),         # x (bf16, lane-dense)
                pl.BlockSpec((Bt, 1), lambda i: (i, 0)),                  # sequence lengths
                pl.BlockSpec((K, C_in, C_out_pad), lambda i: (0, 0, 0)),  # conv weights (resident)
                pl.BlockSpec((1, C_out_pad), lambda i: (0, 0)),           # conv bias
                pl.BlockSpec((1, C_out_pad), lambda i: (0, 0)),           # BN scale
                pl.BlockSpec((1, C_out_pad), lambda i: (0, 0)),           # BN shift
            ],
            out_specs=pl.BlockSpec((Bt, C_out_pad), lambda i: (i, 0)),    # lane-dense, unmasked stores
        ),
        compiler_params=pltpu.CompilerParams(
            dimension_semantics=("parallel",),   # batch blocks shard across v7x's 2 TCs
            vmem_limit_bytes=vmem_limit,
        ),
    )(x_t, lens, w_t, bias_row, scale_row, shift_row)
    return out[:B, :C_out]


def ref_forward(x, mask, weight, bias, gamma, beta, mean, var):
    """Pure-JAX f32 reference of the (eval-mode) PyTorch forward."""
    y = lax.conv_general_dilated(
        x, weight, window_strides=(1,), padding=((PAD, PAD),),
        dimension_numbers=("NCH", "OIH", "NCH"))
    y = y + bias[None, :, None]
    y = y * mask
    s = jnp.sum(y, axis=2)
    s = (s - mean[None, :]) / jnp.sqrt(var[None, :] + BN_EPS) * gamma[None, :] + beta[None, :]
    return jnp.tanh(s)


if __name__ == "__main__":
    B, C_in, C_out, L = 2, 32, 16, 16   # small shapes (module default in_channels=200 is configurable)

    key = jax.random.PRNGKey(0)
    k_x, k_w, k_b, k_g, k_be = jax.random.split(key, 5)

    x = jax.random.normal(k_x, (B, C_in, L), dtype=jnp.float32)

    # conv_len_mask: ones up to each sequence length, broadcast over channels.
    seq_lens = jnp.array([L, 10], dtype=jnp.int32)
    conv_len_mask = (jnp.arange(L)[None, None, :] < seq_lens[:, None, None]).astype(jnp.float32)

    # Deterministic synthetic parameters (Conv1d weight/bias, BatchNorm1d affine + running stats).
    weight = 0.05 * jax.random.normal(k_w, (C_out, C_in, K), dtype=jnp.float32)
    bias = 0.05 * jax.random.normal(k_b, (C_out,), dtype=jnp.float32)
    gamma = 1.0 + 0.1 * jax.random.normal(k_g, (C_out,), dtype=jnp.float32)
    beta = 0.1 * jax.random.normal(k_be, (C_out,), dtype=jnp.float32)
    running_mean = jnp.zeros((C_out,), dtype=jnp.float32)
    running_var = jnp.ones((C_out,), dtype=jnp.float32)

    out = cnn_net_forward(x, conv_len_mask, weight, bias, gamma, beta,
                          running_mean, running_var)
    out = jax.block_until_ready(out)

    expected = ref_forward(x, conv_len_mask, weight, bias, gamma, beta,
                           running_mean, running_var)
    assert out.shape == (B, C_out)
    # Tolerance accounts for bf16 x / bf16 MXU inputs (f32 accumulation everywhere).
    assert jnp.allclose(out, expected, atol=2e-2, rtol=2e-2), \
        float(jnp.max(jnp.abs(out - expected)))
    print("KERNEL_OK")
</pallas_src>

<mosaic_0001>
module attributes {stable_mosaic.version = 11 : i64} {
  func.func @_cnn_kernel(%arg0: i32, %arg1: memref<8x16x32xbf16, #tpu.memory_space<vmem>>, %arg2: memref<8x1xf32, #tpu.memory_space<vmem>>, %arg3: memref<5x32x128xbf16, #tpu.memory_space<vmem>>, %arg4: memref<1x128xf32, #tpu.memory_space<vmem>>, %arg5: memref<1x128xf32, #tpu.memory_space<vmem>>, %arg6: memref<1x128xf32, #tpu.memory_space<vmem>>, %arg7: memref<8x128xf32, #tpu.memory_space<vmem>>) attributes {dimension_semantics = [#tpu.dimension_semantics<parallel>], iteration_bounds = array<i64: 1>, scalar_prefetch = 0 : i64, scratch_operands = 0 : i64, tpu.core_type = #tpu.core_type<tc>, window_params = [{transform_indices = @transform_0, window_bounds = array<i64: 8, 16, 32>}, {transform_indices = @transform_1, window_bounds = array<i64: 8, 1>}, {pipeline_mode = #tpu.pipeline_mode<synchronous>, transform_indices = @transform_2, window_bounds = array<i64: 5, 32, 128>}, {pipeline_mode = #tpu.pipeline_mode<synchronous>, transform_indices = @transform_3, window_bounds = array<i64: 1, 128>}, {pipeline_mode = #tpu.pipeline_mode<synchronous>, transform_indices = @transform_4, window_bounds = array<i64: 1, 128>}, {pipeline_mode = #tpu.pipeline_mode<synchronous>, transform_indices = @transform_5, window_bounds = array<i64: 1, 128>}, {transform_indices = @transform_6, window_bounds = array<i64: 8, 128>}]} {
    %c0 = arith.constant 0 : index
    %c0_0 = arith.constant 0 : index
    %c0_1 = arith.constant 0 : index
    %0 = vector.load %arg1[%c0, %c0_0, %c0_1] : memref<8x16x32xbf16, #tpu.memory_space<vmem>>, vector<8x16x32xbf16>
    %c0_2 = arith.constant 0 : index
    %c0_3 = arith.constant 0 : index
    %1 = vector.load %arg2[%c0_2, %c0_3] : memref<8x1xf32, #tpu.memory_space<vmem>>, vector<8x1xf32>
    %2 = tpu.iota {dimensions = array<i32: 0>} : vector<16x1xi32>
    %3 = arith.sitofp %2 : vector<16x1xi32> to vector<16x1xf32>
    %4 = vector.shape_cast %1 : vector<8x1xf32> to vector<8x1x1xf32>
    %c0_4 = arith.constant 0 : index
    %c0_5 = arith.constant 0 : index
    %5 = vector.load %arg4[%c0_4, %c0_5] : memref<1x128xf32, #tpu.memory_space<vmem>>, vector<1x128xf32>
    %6 = vector.broadcast %1 : vector<8x1xf32> to vector<8x128xf32>
    %7 = vector.broadcast %5 : vector<1x128xf32> to vector<8x128xf32>
    %8 = arith.mulf %6, %7 : vector<8x128xf32>
    %cst = arith.constant 0.000000e+00 : f32
    %9 = vector.broadcast %cst : f32 to vector<16x1xf32>
    %10 = arith.cmpf oge, %3, %9 : vector<16x1xf32>
    %cst_6 = arith.constant -2.000000e+00 : f32
    %11 = vector.broadcast %cst_6 : f32 to vector<8x1x1xf32>
    %12 = arith.addf %4, %11 : vector<8x1x1xf32>
    %cst_7 = arith.constant 1.400000e+01 : f32
    %13 = vector.broadcast %cst_7 : f32 to vector<8x1x1xf32>
    %14 = arith.minimumf %12, %13 : vector<8x1x1xf32>
    %15 = vector.shape_cast %3 : vector<16x1xf32> to vector<1x16x1xf32>
    %16 = vector.broadcast %15 : vector<1x16x1xf32> to vector<8x16x1xf32>
    %17 = vector.broadcast %14 : vector<8x1x1xf32> to vector<8x16x1xf32>
    %18 = arith.cmpf olt, %16, %17 : vector<8x16x1xf32>
    %19 = vector.shape_cast %10 : vector<16x1xi1> to vector<1x16x1xi1>
    %20 = vector.broadcast %19 : vector<1x16x1xi1> to vector<8x16x1xi1>
    %21 = arith.andi %20, %18 : vector<8x16x1xi1>
    %cst_8 = arith.constant 0.000000e+00 : bf16
    %22 = vector.broadcast %cst_8 : bf16 to vector<8x16x32xbf16>
    %23 = vector.shape_cast %21 : vector<8x16x1xi1> to vector<8x16x1xi1>
    %24 = vector.broadcast %23 : vector<8x16x1xi1> to vector<8x16x32xi1>
    %25 = arith.select %24, %0, %22 : vector<8x16x32xi1>, vector<8x16x32xbf16>
    %26 = arith.extf %25 : vector<8x16x32xbf16> to vector<8x16x32xf32>
    %cst_9 = arith.constant dense<0.000000e+00> : vector<8x32xf32>
    %27 = vector.multi_reduction <add>, %26, %cst_9 [1] : vector<8x16x32xf32> to vector<8x32xf32>
    %28 = arith.truncf %27 : vector<8x32xf32> to vector<8x32xbf16>
    %c0_10 = arith.constant 0 : index
    %c0_11 = arith.constant 0 : index
    %c0_12 = arith.constant 0 : index
    %29 = vector.load %arg3[%c0_10, %c0_11, %c0_12] : memref<5x32x128xbf16, #tpu.memory_space<vmem>>, vector<1x32x128xbf16>
    %30 = vector.shape_cast %29 : vector<1x32x128xbf16> to vector<32x128xbf16>
    %cst_13 = arith.constant dense<0.000000e+00> : vector<8x128xf32>
    %31 = tpu.matmul %28, %30, %cst_13 {dimension_numbers = #tpu.dot_dimension_numbers<[1], [0], [0], [1], [0, 0, 1, 1], [], []>} : vector<8x32xbf16>, vector<32x128xbf16>, vector<8x128xf32> -> vector<8x128xf32>
    %32 = arith.addf %8, %31 : vector<8x128xf32>
    %cst_14 = arith.constant 0.000000e+00 : f32
    %33 = vector.broadcast %cst_14 : f32 to vector<16x1xf32>
    %34 = arith.cmpf oge, %3, %33 : vector<16x1xf32>
    %cst_15 = arith.constant -1.000000e+00 : f32
    %35 = vector.broadcast %cst_15 : f32 to vector<8x1x1xf32>
    %36 = arith.addf %4, %35 : vector<8x1x1xf32>
    %cst_16 = arith.constant 1.500000e+01 : f32
    %37 = vector.broadcast %cst_16 : f32 to vector<8x1x1xf32>
    %38 = arith.minimumf %36, %37 : vector<8x1x1xf32>
    %39 = vector.shape_cast %3 : vector<16x1xf32> to vector<1x16x1xf32>
    %40 = vector.broadcast %39 : vector<1x16x1xf32> to vector<8x16x1xf32>
    %41 = vector.broadcast %38 : vector<8x1x1xf32> to vector<8x16x1xf32>
    %42 = arith.cmpf olt, %40, %41 : vector<8x16x1xf32>
    %43 = vector.shape_cast %34 : vector<16x1xi1> to vector<1x16x1xi1>
    %44 = vector.broadcast %43 : vector<1x16x1xi1> to vector<8x16x1xi1>
    %45 = arith.andi %44, %42 : vector<8x16x1xi1>
    %cst_17 = arith.constant 0.000000e+00 : bf16
    %46 = vector.broadcast %cst_17 : bf16 to vector<8x16x32xbf16>
    %47 = vector.shape_cast %45 : vector<8x16x1xi1> to vector<8x16x1xi1>
    %48 = vector.broadcast %47 : vector<8x16x1xi1> to vector<8x16x32xi1>
    %49 = arith.select %48, %0, %46 : vector<8x16x32xi1>, vector<8x16x32xbf16>
    %50 = arith.extf %49 : vector<8x16x32xbf16> to vector<8x16x32xf32>
    %cst_18 = arith.constant dense<0.000000e+00> : vector<8x32xf32>
    %51 = vector.multi_reduction <add>, %50, %cst_18 [1] : vector<8x16x32xf32> to vector<8x32xf32>
    %52 = arith.truncf %51 : vector<8x32xf32> to vector<8x32xbf16>
    %c1 = arith.constant 1 : index
    %c0_19 = arith.constant 0 : index
    %c0_20 = arith.constant 0 : index
    %53 = vector.load %arg3[%c1, %c0_19, %c0_20] : memref<5x32x128xbf16, #tpu.memory_space<vmem>>, vector<1x32x128xbf16>
    %54 = vector.shape_cast %53 : vector<1x32x128xbf16> to vector<32x128xbf16>
    %cst_21 = arith.constant dense<0.000000e+00> : vector<8x128xf32>
    %55 = tpu.matmul %52, %54, %cst_21 {dimension_numbers = #tpu.dot_dimension_numbers<[1], [0], [0], [1], [0, 0, 1, 1], [], []>} : vector<8x32xbf16>, vector<32x128xbf16>, vector<8x128xf32> -> vector<8x128xf32>
    %56 = arith.addf %32, %55 : vector<8x128xf32>
    %cst_22 = arith.constant 0.000000e+00 : f32
    %57 = vector.broadcast %cst_22 : f32 to vector<16x1xf32>
    %58 = arith.cmpf oge, %3, %57 : vector<16x1xf32>
    %cst_23 = arith.constant 0.000000e+00 : f32
    %59 = vector.broadcast %cst_23 : f32 to vector<8x1x1xf32>
    %60 = arith.addf %4, %59 : vector<8x1x1xf32>
    %cst_24 = arith.constant 1.600000e+01 : f32
    %61 = vector.broadcast %cst_24 : f32 to vector<8x1x1xf32>
    %62 = arith.minimumf %60, %61 : vector<8x1x1xf32>
    %63 = vector.shape_cast %3 : vector<16x1xf32> to vector<1x16x1xf32>
    %64 = vector.broadcast %63 : vector<1x16x1xf32> to vector<8x16x1xf32>
    %65 = vector.broadcast %62 : vector<8x1x1xf32> to vector<8x16x1xf32>
    %66 = arith.cmpf olt, %64, %65 : vector<8x16x1xf32>
    %67 = vector.shape_cast %58 : vector<16x1xi1> to vector<1x16x1xi1>
    %68 = vector.broadcast %67 : vector<1x16x1xi1> to vector<8x16x1xi1>
    %69 = arith.andi %68, %66 : vector<8x16x1xi1>
    %cst_25 = arith.constant 0.000000e+00 : bf16
    %70 = vector.broadcast %cst_25 : bf16 to vector<8x16x32xbf16>
    %71 = vector.shape_cast %69 : vector<8x16x1xi1> to vector<8x16x1xi1>
    %72 = vector.broadcast %71 : vector<8x16x1xi1> to vector<8x16x32xi1>
    %73 = arith.select %72, %0, %70 : vector<8x16x32xi1>, vector<8x16x32xbf16>
    %74 = arith.extf %73 : vector<8x16x32xbf16> to vector<8x16x32xf32>
    %cst_26 = arith.constant dense<0.000000e+00> : vector<8x32xf32>
    %75 = vector.multi_reduction <add>, %74, %cst_26 [1] : vector<8x16x32xf32> to vector<8x32xf32>
    %76 = arith.truncf %75 : vector<8x32xf32> to vector<8x32xbf16>
    %c2 = arith.constant 2 : index
    %c0_27 = arith.constant 0 : index
    %c0_28 = arith.constant 0 : index
    %77 = vector.load %arg3[%c2, %c0_27, %c0_28] : memref<5x32x128xbf16, #tpu.memory_space<vmem>>, vector<1x32x128xbf16>
    %78 = vector.shape_cast %77 : vector<1x32x128xbf16> to vector<32x128xbf16>
    %cst_29 = arith.constant dense<0.000000e+00> : vector<8x128xf32>
    %79 = tpu.matmul %76, %78, %cst_29 {dimension_numbers = #tpu.dot_dimension_numbers<[1], [0], [0], [1], [0, 0, 1, 1], [], []>} : vector<8x32xbf16>, vector<32x128xbf16>, vector<8x128xf32> -> vector<8x128xf32>
    %80 = arith.addf %56, %79 : vector<8x128xf32>
    %cst_30 = arith.constant 1.000000e+00 : f32
    %81 = vector.broadcast %cst_30 : f32 to vector<16x1xf32>
    %82 = arith.cmpf oge, %3, %81 : vector<16x1xf32>
    %cst_31 = arith.constant 1.000000e+00 : f32
    %83 = vector.broadcast %cst_31 : f32 to vector<8x1x1xf32>
    %84 = arith.addf %4, %83 : vector<8x1x1xf32>
    %cst_32 = arith.constant 1.600000e+01 : f32
    %85 = vector.broadcast %cst_32 : f32 to vector<8x1x1xf32>
    %86 = arith.minimumf %84, %85 : vector<8x1x1xf32>
    %87 = vector.shape_cast %3 : vector<16x1xf32> to vector<1x16x1xf32>
    %88 = vector.broadcast %87 : vector<1x16x1xf32> to vector<8x16x1xf32>
    %89 = vector.broadcast %86 : vector<8x1x1xf32> to vector<8x16x1xf32>
    %90 = arith.cmpf olt, %88, %89 : vector<8x16x1xf32>
    %91 = vector.shape_cast %82 : vector<16x1xi1> to vector<1x16x1xi1>
    %92 = vector.broadcast %91 : vector<1x16x1xi1> to vector<8x16x1xi1>
    %93 = arith.andi %92, %90 : vector<8x16x1xi1>
    %cst_33 = arith.constant 0.000000e+00 : bf16
    %94 = vector.broadcast %cst_33 : bf16 to vector<8x16x32xbf16>
    %95 = vector.shape_cast %93 : vector<8x16x1xi1> to vector<8x16x1xi1>
    %96 = vector.broadcast %95 : vector<8x16x1xi1> to vector<8x16x32xi1>
    %97 = arith.select %96, %0, %94 : vector<8x16x32xi1>, vector<8x16x32xbf16>
    %98 = arith.extf %97 : vector<8x16x32xbf16> to vector<8x16x32xf32>
    %cst_34 = arith.constant dense<0.000000e+00> : vector<8x32xf32>
    %99 = vector.multi_reduction <add>, %98, %cst_34 [1] : vector<8x16x32xf32> to vector<8x32xf32>
    %100 = arith.truncf %99 : vector<8x32xf32> to vector<8x32xbf16>
    %c3 = arith.constant 3 : index
    %c0_35 = arith.constant 0 : index
    %c0_36 = arith.constant 0 : index
    %101 = vector.load %arg3[%c3, %c0_35, %c0_36] : memref<5x32x128xbf16, #tpu.memory_space<vmem>>, vector<1x32x128xbf16>
    %102 = vector.shape_cast %101 : vector<1x32x128xbf16> to vector<32x128xbf16>
    %cst_37 = arith.constant dense<0.000000e+00> : vector<8x128xf32>
    %103 = tpu.matmul %100, %102, %cst_37 {dimension_numbers = #tpu.dot_dimension_numbers<[1], [0], [0], [1], [0, 0, 1, 1], [], []>} : vector<8x32xbf16>, vector<32x128xbf16>, vector<8x128xf32> -> vector<8x128xf32>
    %104 = arith.addf %80, %103 : vector<8x128xf32>
    %cst_38 = arith.constant 2.000000e+00 : f32
    %105 = vector.broadcast %cst_38 : f32 to vector<16x1xf32>
    %106 = arith.cmpf oge, %3, %105 : vector<16x1xf32>
    %cst_39 = arith.constant 2.000000e+00 : f32
    %107 = vector.broadcast %cst_39 : f32 to vector<8x1x1xf32>
    %108 = arith.addf %4, %107 : vector<8x1x1xf32>
    %cst_40 = arith.constant 1.600000e+01 : f32
    %109 = vector.broadcast %cst_40 : f32 to vector<8x1x1xf32>
    %110 = arith.minimumf %108, %109 : vector<8x1x1xf32>
    %111 = vector.shape_cast %3 : vector<16x1xf32> to vector<1x16x1xf32>
    %112 = vector.broadcast %111 : vector<1x16x1xf32> to vector<8x16x1xf32>
    %113 = vector.broadcast %110 : vector<8x1x1xf32> to vector<8x16x1xf32>
    %114 = arith.cmpf olt, %112, %113 : vector<8x16x1xf32>
    %115 = vector.shape_cast %106 : vector<16x1xi1> to vector<1x16x1xi1>
    %116 = vector.broadcast %115 : vector<1x16x1xi1> to vector<8x16x1xi1>
    %117 = arith.andi %116, %114 : vector<8x16x1xi1>
    %cst_41 = arith.constant 0.000000e+00 : bf16
    %118 = vector.broadcast %cst_41 : bf16 to vector<8x16x32xbf16>
    %119 = vector.shape_cast %117 : vector<8x16x1xi1> to vector<8x16x1xi1>
    %120 = vector.broadcast %119 : vector<8x16x1xi1> to vector<8x16x32xi1>
    %121 = arith.select %120, %0, %118 : vector<8x16x32xi1>, vector<8x16x32xbf16>
    %122 = arith.extf %121 : vector<8x16x32xbf16> to vector<8x16x32xf32>
    %cst_42 = arith.constant dense<0.000000e+00> : vector<8x32xf32>
    %123 = vector.multi_reduction <add>, %122, %cst_42 [1] : vector<8x16x32xf32> to vector<8x32xf32>
    %124 = arith.truncf %123 : vector<8x32xf32> to vector<8x32xbf16>
    %c4 = arith.constant 4 : index
    %c0_43 = arith.constant 0 : index
    %c0_44 = arith.constant 0 : index
    %125 = vector.load %arg3[%c4, %c0_43, %c0_44] : memref<5x32x128xbf16, #tpu.memory_space<vmem>>, vector<1x32x128xbf16>
    %126 = vector.shape_cast %125 : vector<1x32x128xbf16> to vector<32x128xbf16>
    %cst_45 = arith.constant dense<0.000000e+00> : vector<8x128xf32>
    %127 = tpu.matmul %124, %126, %cst_45 {dimension_numbers = #tpu.dot_dimension_numbers<[1], [0], [0], [1], [0, 0, 1, 1], [], []>} : vector<8x32xbf16>, vector<32x128xbf16>, vector<8x128xf32> -> vector<8x128xf32>
    %128 = arith.addf %104, %127 : vector<8x128xf32>
    %c0_46 = arith.constant 0 : index
    %c0_47 = arith.constant 0 : index
    %129 = vector.load %arg5[%c0_46, %c0_47] : memref<1x128xf32, #tpu.memory_space<vmem>>, vector<1x128xf32>
    %130 = vector.broadcast %129 : vector<1x128xf32> to vector<8x128xf32>
    %131 = arith.mulf %128, %130 : vector<8x128xf32>
    %c0_48 = arith.constant 0 : index
    %c0_49 = arith.constant 0 : index
    %132 = vector.load %arg6[%c0_48, %c0_49] : memref<1x128xf32, #tpu.memory_space<vmem>>, vector<1x128xf32>
    %133 = vector.broadcast %132 : vector<1x128xf32> to vector<8x128xf32>
    %134 = arith.addf %131, %133 : vector<8x128xf32>
    %135 = math.tanh %134 : vector<8x128xf32>
    %c0_50 = arith.constant 0 : index
    %c0_51 = arith.constant 0 : index
    %136 = vector.load %arg7[%c0_50, %c0_51] : memref<8x128xf32, #tpu.memory_space<vmem>>, vector<8x128xf32>
    tpu.vector_store %arg7[%c0_50, %c0_51], %135 {strides = array<i32>} : memref<8x128xf32, #tpu.memory_space<vmem>>, vector<8x128xf32>,
    return
  }
  func.func @transform_0(%arg0: i32) -> (i32, i32, i32) {
    %c0_i32 = arith.constant 0 : i32
    %c0_i32_0 = arith.constant 0 : i32
    %c0_i32_1 = arith.constant 0 : i32
    return %arg0, %c0_i32, %c0_i32_0 : i32, i32, i32
  }
  func.func @transform_1(%arg0: i32) -> (i32, i32) {
    %c0_i32 = arith.constant 0 : i32
    %c0_i32_0 = arith.constant 0 : i32
    return %arg0, %c0_i32 : i32, i32
  }
  func.func @transform_2(%arg0: i32) -> (i32, i32, i32) {
    %c0_i32 = arith.constant 0 : i32
    %c0_i32_0 = arith.constant 0 : i32
    %c0_i32_1 = arith.constant 0 : i32
    %c0_i32_2 = arith.constant 0 : i32
    return %c0_i32, %c0_i32_0, %c0_i32_1 : i32, i32, i32
  }
  func.func @transform_3(%arg0: i32) -> (i32, i32) {
    %c0_i32 = arith.constant 0 : i32
    %c0_i32_0 = arith.constant 0 : i32
    %c0_i32_1 = arith.constant 0 : i32
    return %c0_i32, %c0_i32_0 : i32, i32
  }
  func.func @transform_4(%arg0: i32) -> (i32, i32) {
    %c0_i32 = arith.constant 0 : i32
    %c0_i32_0 = arith.constant 0 : i32
    %c0_i32_1 = arith.constant 0 : i32
    return %c0_i32, %c0_i32_0 : i32, i32
  }
  func.func @transform_5(%arg0: i32) -> (i32, i32) {
    %c0_i32 = arith.constant 0 : i32
    %c0_i32_0 = arith.constant 0 : i32
    %c0_i32_1 = arith.constant 0 : i32
    return %c0_i32, %c0_i32_0 : i32, i32
  }
  func.func @transform_6(%arg0: i32) -> (i32, i32) {
    %c0_i32 = arith.constant 0 : i32
    %c0_i32_0 = arith.constant 0 : i32
    return %arg0, %c0_i32 : i32, i32
  }
}

</mosaic_0001>

<bundles_post_ra>
// kernel: tpu_custom_call.1
= control target key start
LH: loop header
LB: loop body
LE: loop exit
PB: predicated region body
PF: predicated region fallthrough
CT: control target
= control target key end

     0   :  { %11 = vsyncpa [#allocation3], 0  ;;  %s3703_s0 = inlined_call_operand.hbm [shape: bf16[8,16,32], index: 0, kind: input, shape index: {}]   ;;  %s3704_s1 = inlined_call_operand.vmem [shape: f32[8,1], index: 1, kind: input, shape index: {}]   ;;  %s3705_s2 = inlined_call_operand.hbm [shape: bf16[5,32,128], index: 2, kind: input, shape index: {}]   ;;  %s3706_s3 = inlined_call_operand.vmem [shape: f32[1,128], index: 3, kind: input, shape index: {}]   ;;  %s3707_s4 = inlined_call_operand.vmem [shape: f32[1,128], index: 4, kind: input, shape index: {}]   ;;  %s3708_s5 = inlined_call_operand.vmem [shape: f32[1,128], index: 5, kind: input, shape index: {}]   ;;  %s3709_s6 = inlined_call_operand.hbm [shape: f32[8,128], index: 6, kind: output, shape index: {}]  }
   0x1   :  { %12 = vsyncpa [#allocation6], 0 }
   0x2   :  { %13 = vsyncpa [#allocation4], 0  ;;  %s2349_s21 = smov [#allocation2]   ;;  %s2277_s25 = scalar_lea.hbm %s3703_s0, 1024 }
   0x3   :  { %s19_s22 = sshll.u32 %s2349_s21, 4  ;;  %p2278_p0 = scmp.ne.s32.totalorder %s3703_s0, %s2277_s25  ;;  %s20_s22 = int_to_ptr.vmem [resolvable:$true] %s19_s22 }
   0x4   :  { %p2281_p1 = scmp.lt.u32.totalorder %s2277_s25, %s3703_s0 }
   0x6   :  { %p2283_p2 = pnand %p2281_p1, %p2278_p0 }
   0x8   :  { %2286 = shalt.err (!%p2283_p2)
}
   0x9   :  { %s2287_s30 = scalar_lea.vmem %s20_s22, 1024  ;;  %p2292_p4 = scmp.lt.s32.totalorder %s20_s22, %s20_s22 }
   0xa   :  { %p2288_p3 = scmp.ne.s32.totalorder %s20_s22, %s2287_s30  ;;  %p2293_p5 = scmp.lt.s32.totalorder %s2287_s30, %s2287_s30 }
   0xc   :  { %p2294_p6 = por %p2293_p5, %p2292_p4 }
   0xe   :  { %p2295_p7 = pnand %p2294_p6, %p2288_p3 }
  0x10   :  { %2298 = shalt.err (!%p2295_p7)
}
  0x11   :  { %s2350_s7 = smov 64   ;;  %s2351_s8 = smov 4  }
  0x12   :  { %25 = dma.hbm_to_vmem [thread:$0]  %s3703_s0, 1024, %s20_s22, [#allocation3], %s2350_s7, %s2350_s7, %s2351_s8  }
  0x13   :  { %s2352_s11 = smov [#allocation5]   ;;  %s2299_s15 = scalar_lea.hbm %s3705_s2, 1280 }
  0x14   :  { %s33_s12 = sshll.u32 %s2352_s11, 4  ;;  %p2300_p8 = scmp.ne.s32.totalorder %s3705_s2, %s2299_s15  ;;  %s34_s12 = int_to_ptr.vmem [resolvable:$true] %s33_s12 }
  0x15   :  { %p2303_p9 = scmp.lt.u32.totalorder %s2299_s15, %s3705_s2 }
  0x17   :  { %p2305_p10 = pnand %p2303_p9, %p2300_p8 }
  0x19   :  { %2308 = shalt.err (!%p2305_p10)
}
  0x1a   :  { %s2309_s20 = scalar_lea.vmem %s34_s12, 1280  ;;  %p2314_p12 = scmp.lt.s32.totalorder %s34_s12, %s34_s12 }
  0x1b   :  { %p2310_p11 = scmp.ne.s32.totalorder %s34_s12, %s2309_s20  ;;  %p2315_p13 = scmp.lt.s32.totalorder %s2309_s20, %s2309_s20 }
  0x1d   :  { %p2316_p0 = por %p2315_p13, %p2314_p12 }
  0x1f   :  { %p2317_p1 = pnand %p2316_p0, %p2310_p11 }
  0x21   :  { %2320 = shalt.err (!%p2317_p1)
}
  0x22   :  { %39 = dma.hbm_to_vmem [thread:$0]  %s3705_s2, 1280, %s34_s12, [#allocation6], %s2350_s7, %s2350_s7, %s2351_s8  }
  0x23   :  { %2343 = dma.done.wait [#allocation3], 1024  }
  0x24   :  { %2344 = vsyncadd [#allocation3], 4294966272 }
  0x25   :  { %2345 = dma.done.wait [#allocation6], 1280  }
  0x26   :  { %2346 = vsyncadd [#allocation6], 4294966016  ;;  %v70_v0 = vlaneseq  ;;  %v2353_v1 = vmov 0   ;;  %v2354_v2 = vmov 1966171168   ;;  %v69_v7 = vld [vmem:[%s3704_s1] sm:$0xff] }
  0x27   :  { %2245 = vset.pattern.permute.xlu0 %v2353_v1  ;;  %v78_v3 = vunpack.c.l.s4 %v2354_v2  ;;  %2246 = vset.pattern.permute.xlu1 %v2353_v1  ;;  %v76_v10 = vcombine.high %v69_v7, %v69_v7 }
  0x28   :  { %v71_v4 = vshrl.u32 %v70_v0, 7 }
  0x29   :  { %v79_v5 = vunpack.c.0.s8 %v78_v3 }
  0x2a   :  { %v72_v8 = vadd.s32 8, %v71_v4  ;;  %v2422_v11 = vcvt.s32.f32 %v71_v4  ;;  %v2424_v12 = vsub.s32 0, %v71_v4 }
  0x2b   :  { %v82_v6 = vsub.s32 %v79_v5, %v71_v4 }
  0x2c   :  { %v2428_v16 = vcvt.s32.f32 %v72_v8  ;;  %vm145_vm0 = vcmp.ge.f32.partialorder %v2422_v11, 0.0 }
  0x2d   :  { %v83_v9 = vrot.slane %v69_v7, %v82_v6  ;;  %v90_v15 = vrot.slane %v76_v10, %v82_v6 }
  0x2e   :  { %vm146_vm1 = vcmp.ge.f32.partialorder %v2428_v16, 0.0 }
  0x2f   :  { %v2426_v13 = vrot.slane %v83_v9, %v82_v6  ;;  %v91_v14 = vcombine.high %v83_v9, %v83_v9  ;;  %v2437_v20 = vrot.slane %v90_v15, %v82_v6  ;;  %v92_v21 = vcombine.high %v90_v15, %v90_v15 }
  0x31   :  { %v944_v17 = vmin.f32 %v2426_v13, 16.0  ;;  %v2431_v18 = vrot.slane %v91_v14, %v82_v6  ;;  %v2435_v19 = vcombine.high %v2426_v13, %v2426_v13  ;;  %v948_v25 = vmin.f32 %v2437_v20, 16.0 }
  0x32   :  { %v2457_v31 = vrot.slane %v92_v21, %v82_v6  ;;  %v2476_v35 = vcombine.high %v2437_v20, %v2437_v20  ;;  %v147_v45 = vadd.f32 -2.0, %v2426_v13  ;;  %v547_v61 = vadd.f32 -1.0, %v2426_v13 }
  0x33   :  { %v963_v22 = vrot.slane %v944_v17, %v2424_v12  ;;  %v945_v23 = vmin.f32 %v2431_v18, 16.0  ;;  %v946_v24 = vmin.f32 %v2435_v19, 16.0  ;;  %v2447_v26 = vcombine.high %v2431_v18, %v2431_v18 }
  0x34   :  { %v979_v29 = vrot.slane %v948_v25, %v2424_v12  ;;  %v949_v38 = vmin.f32 %v2457_v31, 16.0  ;;  %v950_v40 = vmin.f32 %v2476_v35, 16.0  ;;  %v2494_v43 = vcombine.high %v2457_v31, %v2457_v31 }
  0x35   :  { %vm1000_vm2 = vcmp.lt.f32.partialorder %v2422_v11, %v963_v22  ;;  %v967_v27 = vrot.slane %v945_v23, %v2424_v12  ;;  %vm1001_vm3 = vcmp.lt.f32.partialorder %v2428_v16, %v963_v22  ;;  %v971_v28 = vrot.slane %v946_v24, %v2424_v12 }
  0x36   :  { %vm1016_vm4 = vmand %vm145_vm0, %vm1000_vm2  ;;  %v947_v30 = vmin.f32 %v2447_v26, 16.0  ;;  %vm1008_vm13 = vcmp.lt.f32.partialorder %v2422_v11, %v979_v29  ;;  %vm1009_vm15 = vcmp.lt.f32.partialorder %v2428_v16, %v979_v29  ;;  %v983_v42 = vrot.slane %v949_v38, %v2424_v12 }
  0x37   :  { %v1032_v32 = vsel %vm1016_vm4, 1, %v2353_v1  ;;  %vm1002_vm5 = vcmp.lt.f32.partialorder %v2422_v11, %v967_v27  ;;  %vm1017_vm6 = vmand %vm146_vm1, %vm1001_vm3  ;;  %vm1003_vm7 = vcmp.lt.f32.partialorder %v2428_v16, %v967_v27  ;;  %vm1004_vm8 = vcmp.lt.f32.partialorder %v2422_v11, %v971_v28 }
  0x38   :  { %1049 = vperm.xlu0 %2245, %v1032_v32   ;;  %vm1018_vm9 = vmand %vm145_vm0, %vm1002_vm5  ;;  %v1033_v34 = vsel %vm1017_vm6, 1, %v2353_v1  ;;  %vm1005_vm11 = vcmp.lt.f32.partialorder %v2428_v16, %v971_v28  ;;  %v975_v37 = vrot.slane %v947_v30, %v2424_v12  ;;  %v987_v47 = vrot.slane %v950_v40, %v2424_v12 }
  0x39   :  { %v1034_v33 = vsel %vm1018_vm9, 1, %v2353_v1  ;;  %vm1019_vm10 = vmand %vm146_vm1, %vm1003_vm7  ;;  %vm1010_vm7 = vcmp.lt.f32.partialorder %v2422_v11, %v983_v42  ;;  %v951_v48 = vmin.f32 %v2494_v43, 16.0  ;;  %vm1011_vm9 = vcmp.lt.f32.partialorder %v2428_v16, %v983_v42 }
  0x3a   :  { %1055 = vperm.xlu1 %2246, %v1034_v33   ;;  %vm1020_vm12 = vmand %vm145_vm0, %vm1004_vm8  ;;  %v1035_v36 = vsel %vm1019_vm10, 1, %v2353_v1  ;;  %vm1006_vm3 = vcmp.lt.f32.partialorder %v2422_v11, %v975_v37  ;;  %vm1007_vm5 = vcmp.lt.f32.partialorder %v2428_v16, %v975_v37  ;;  %v155_v50 = vmin.f32 %v147_v45, 14.0 }
  0x3b   :  { %vm1021_vm14 = vmand %vm146_vm1, %vm1005_vm11  ;;  %v1036_v39 = vsel %vm1020_vm12, 1, %v2353_v1  ;;  %vm1012_vm11 = vcmp.lt.f32.partialorder %v2422_v11, %v987_v47  ;;  %v991_v52 = vrot.slane %v951_v48, %v2424_v12  ;;  %v148_v53 = vadd.f32 -2.0, %v2431_v18 }
  0x3c   :  { %1052 = vperm.xlu0 %2245, %v1033_v34   ;;  %vm1024_vm2 = vmand %vm145_vm0, %vm1008_vm13  ;;  %v1037_v41 = vsel %vm1021_vm14, 1, %v2353_v1  ;;  %vm1013_vm13 = vcmp.lt.f32.partialorder %v2428_v16, %v987_v47  ;;  %v174_v55 = vrot.slane %v155_v50, %v2424_v12  ;;  %v149_v58 = vadd.f32 -2.0, %v2435_v19 }
  0x3d   :  { %vm1025_vm4 = vmand %vm146_vm1, %vm1009_vm15  ;;  %v1040_v44 = vsel %vm1024_vm2, 1, %v2353_v1  ;;  %vm1014_vm15 = vcmp.lt.f32.partialorder %v2422_v11, %v991_v52  ;;  %v156_v57 = vmin.f32 %v148_v53, 14.0  ;;  %v150_v59 = vadd.f32 -2.0, %v2447_v26 }
  0x3e   :  { %1058 = vperm.xlu1 %2246, %v1035_v36   ;;  %vm1022_vm6 = vmand %vm145_vm0, %vm1006_vm3  ;;  %v1041_v46 = vsel %vm1025_vm4, 1, %v2353_v1  ;;  %vm1015_vm3 = vcmp.lt.f32.partialorder %v2428_v16, %v991_v52  ;;  %v157_v0 = vmin.f32 %v149_v58, 14.0  ;;  %v1327_v3 = vadd.f32 1.0, %v2426_v13 }
  0x3f   :  { %vm1023_vm8 = vmand %vm146_vm1, %vm1007_vm5  ;;  %v1038_v49 = vsel %vm1022_vm6, 1, %v2353_v1  ;;  %vm211_vm5 = vcmp.lt.f32.partialorder %v2422_v11, %v174_v55  ;;  %v178_v63 = vrot.slane %v156_v57, %v2424_v12  ;;  %v158_v2 = vmin.f32 %v150_v59, 14.0 }
  0x40   :  { %1061 = vperm.xlu0 %2245, %v1036_v39   ;;  %vm1026_vm10 = vmand %vm145_vm0, %vm1010_vm7  ;;  %v1039_v51 = vsel %vm1023_vm8, 1, %v2353_v1  ;;  %vm212_vm7 = vcmp.lt.f32.partialorder %v2428_v16, %v174_v55  ;;  %v555_v5 = vmin.f32 %v547_v61, 15.0  ;;  %v182_v7 = vrot.slane %v157_v0, %v2424_v12 }
  0x41   :  { %vm1027_vm12 = vmand %vm146_vm1, %vm1011_vm9  ;;  %v1042_v54 = vsel %vm1026_vm10, 1, %v2353_v1  ;;  %vm213_vm9 = vcmp.lt.f32.partialorder %v2422_v11, %v178_v63  ;;  %v186_v8 = vrot.slane %v158_v2, %v2424_v12  ;;  %v1335_v9 = vmin.f32 %v1327_v3, 16.0 }
  0x42   :  { %1064 = vperm.xlu1 %2246, %v1037_v41   ;;  %vm1028_vm14 = vmand %vm145_vm0, %vm1012_vm11  ;;  %v1043_v56 = vsel %vm1027_vm12, 1, %v2353_v1  ;;  %v1328_v10 = vadd.f32 1.0, %v2431_v18  ;;  %v2553_v14 = vrot.slane %v555_v5, %v2424_v12  ;;  %vm214_vm11 = vcmp.lt.f32.partialorder %v2428_v16, %v178_v63 }
  0x43   :  { %vm1029_vm2 = vmand %vm146_vm1, %vm1013_vm13  ;;  %v1044_v60 = vsel %vm1028_vm14, 1, %v2353_v1  ;;  %v548_v17 = vadd.f32 -1.0, %v2431_v18  ;;  %vm215_vm13 = vcmp.lt.f32.partialorder %v2422_v11, %v182_v7  ;;  %v1354_v22 = vrot.slane %v1335_v9, %v2424_v12 }
  0x44   :  { %1073 = vperm.xlu0 %2245, %v1040_v44   ;;  %vm1030_vm4 = vmand %vm145_vm0, %vm1014_vm15  ;;  %v1045_v62 = vsel %vm1029_vm2, 1, %v2353_v1  ;;  %vm216_vm15 = vcmp.lt.f32.partialorder %v2428_v16, %v182_v7  ;;  %vm217_vm2 = vcmp.lt.f32.partialorder %v2422_v11, %v186_v8  ;;  %v1336_v23 = vmin.f32 %v1328_v10, 16.0 }
  0x45   :  { %vm1031_vm6 = vmand %vm146_vm1, %vm1015_vm3  ;;  %v1046_v4 = vsel %vm1030_vm4, 1, %v2353_v1  ;;  %v556_v25 = vmin.f32 %v548_v17, 15.0  ;;  %v549_v27 = vadd.f32 -1.0, %v2435_v19  ;;  %v550_v28 = vadd.f32 -1.0, %v2447_v26 }
  0x46   :  { %1076 = vperm.xlu1 %2246, %v1041_v46   ;;  %vm231_vm8 = vmand %vm145_vm0, %vm211_vm5  ;;  %v1047_v6 = vsel %vm1031_vm6, 1, %v2353_v1  ;;  %v151_v29 = vadd.f32 -2.0, %v2437_v20  ;;  %v1722_v30 = vadd.f32 2.0, %v2426_v13  ;;  %v1723_v32 = vadd.f32 2.0, %v2431_v18 }
  0x47   :  { %vm232_vm10 = vmand %vm146_vm1, %vm212_vm7  ;;  %v247_v15 = vsel %vm231_vm8, 1, %v2353_v1  ;;  %v551_v33 = vadd.f32 -1.0, %v2437_v20  ;;  %v2578_v36 = vrot.slane %v556_v25, %v2424_v12  ;;  %v557_v37 = vmin.f32 %v549_v27, 15.0 }
  0x48   :  { %1067 = vperm.xlu0 %2245, %v1038_v49   ;;  %vm233_vm12 = vmand %vm145_vm0, %vm213_vm9  ;;  %v248_v21 = vsel %vm232_vm10, 1, %v2353_v1  ;;  %v558_v38 = vmin.f32 %v550_v28, 15.0  ;;  %vm1325_vm5 = vcmp.ge.f32.partialorder %v2422_v11, 1.0  ;;  %v1730_v13 = vmin.f32 %v1722_v30, 16.0 }
  0x49   :  { %vm234_vm14 = vmand %vm146_vm1, %vm214_vm11  ;;  %v249_v24 = vsel %vm233_vm12, 1, %v2353_v1  ;;  %v1731_v39 = vmin.f32 %v1723_v32, 16.0  ;;  %v559_v18 = vmin.f32 %v551_v33, 15.0  ;;  %vm218_vm6 = vcmp.lt.f32.partialorder %v2428_v16, %v186_v8 }
  0x4a   :  { %1070 = vperm.xlu1 %2246, %v1039_v51   ;;  %vm235_vm3 = vmand %vm145_vm0, %vm215_vm13  ;;  %v250_v34 = vsel %vm234_vm14, 1, %v2353_v1  ;;  %v1329_v41 = vadd.f32 1.0, %v2435_v19  ;;  %v2589_v42 = vrot.slane %v557_v37, %v2424_v12  ;;  %v159_v44 = vmin.f32 %v151_v29, 14.0 }
  0x4b   :  { %vm236_vm4 = vmand %vm146_vm1, %vm216_vm15  ;;  %v251_v40 = vsel %vm235_vm3, 1, %v2353_v1  ;;  %v2596_v45 = vrot.slane %v558_v38, %v2424_v12  ;;  %v2599_v46 = vrot.slane %v1730_v13, %v2424_v12  ;;  %v2602_v47 = vrot.slane %v1731_v39, %v2424_v12 }
  0x4c   :  { %1079 = vperm.xlu0 %2245, %v1042_v54   ;;  %vm237_vm7 = vmand %vm145_vm0, %vm217_vm2  ;;  %v252_v48 = vsel %vm236_vm4, 1, %v2353_v1  ;;  %vm1391_vm8 = vcmp.lt.f32.partialorder %v2422_v11, %v1354_v22  ;;  %v1358_v49 = vrot.slane %v1336_v23, %v2424_v12  ;;  %v2608_v50 = vrot.slane %v559_v18, %v2424_v12 }
  0x4d   :  { %vm238_vm9 = vmand %vm146_vm1, %vm218_vm6  ;;  %vm1326_vm10 = vcmp.ge.f32.partialorder %v2428_v16, 1.0  ;;  %vm1392_vm11 = vcmp.lt.f32.partialorder %v2428_v16, %v1354_v22  ;;  %v152_v51 = vadd.f32 -2.0, %v2457_v31  ;;  %v253_v52 = vsel %vm237_vm7, 1, %v2353_v1 }
  0x4e   :  { %1082 = vperm.xlu1 %2246, %v1043_v56   ;;  %v1337_v53 = vmin.f32 %v1329_v41, 16.0  ;;  %vm1411_vm12 = vmand %vm1325_vm5, %vm1391_vm8  ;;  %v190_v54 = vrot.slane %v159_v44, %v2424_v12  ;;  %v1330_v55 = vadd.f32 1.0, %v2447_v26  ;;  %v1724_v56 = vadd.f32 2.0, %v2435_v19 }
  0x4f   :  { %v254_v57 = vsel %vm238_vm9, 1, %v2353_v1  ;;  %vm1412_vm13 = vmand %vm1326_vm10, %vm1392_vm11  ;;  %vm1393_vm14 = vcmp.lt.f32.partialorder %v2422_v11, %v1358_v49  ;;  %v552_v58 = vadd.f32 -1.0, %v2457_v31  ;;  %v1725_v59 = vadd.f32 2.0, %v2447_v26 }
  0x50   :  { %1085 = vperm.xlu0 %2245, %v1044_v60   ;;  %vm1394_vm15 = vcmp.lt.f32.partialorder %v2428_v16, %v1358_v49  ;;  %v160_v60 = vmin.f32 %v152_v51, 14.0  ;;  %v1732_v61 = vmin.f32 %v1724_v56, 16.0  ;;  %v1427_v19 = vsel %vm1411_vm12, 1, %v2353_v1  ;;  %vm1413_vm2 = vmand %vm1325_vm5, %vm1393_vm14 }
  0x51   :  { %v1362_v63 = vrot.slane %v1337_v53, %v2424_v12  ;;  %v560_v0 = vmin.f32 %v552_v58, 15.0  ;;  %v1733_v2 = vmin.f32 %v1725_v59, 16.0  ;;  %v1428_v3 = vsel %vm1412_vm13, 1, %v2353_v1  ;;  %vm1414_vm4 = vmand %vm1326_vm10, %vm1394_vm15 }
  0x52   :  { %1088 = vperm.xlu1 %2246, %v1045_v62   ;;  %v553_v62 = vadd.f32 -1.0, %v2476_v35  ;;  %vm219_vm3 = vcmp.lt.f32.partialorder %v2422_v11, %v190_v54  ;;  %v2636_v26 = vrot.slane %v1732_v61, %v2424_v12  ;;  %v1726_v7 = vadd.f32 2.0, %v2437_v20 }
  0x53   :  { %v2639_v5 = vrot.slane %v560_v0, %v2424_v12  ;;  %v554_v8 = vadd.f32 -1.0, %v2494_v43  ;;  %v1429_v10 = vsel %vm1413_vm2, 1, %v2353_v1  ;;  %vm220_vm6 = vcmp.lt.f32.partialorder %v2428_v16, %v190_v54  ;;  %vm239_vm7 = vmand %vm145_vm0, %vm219_vm3 }
  0x54   :  { %1091 = vperm.xlu0 %2245, %v1046_v4   ;;  %v561_v4 = vmin.f32 %v553_v62, 15.0  ;;  %v1338_v17 = vmin.f32 %v1330_v55, 16.0  ;;  %v1430_v22 = vsel %vm1414_vm4, 1, %v2353_v1  ;;  %vm1395_vm8 = vcmp.lt.f32.partialorder %v2422_v11, %v1362_v63  ;;  %vm240_vm9 = vmand %vm146_vm1, %vm220_vm6  ;;  %v2249_v55 = vld [vmem:[#allocation5 + $0x28] sm:$0xff]  }
  0x55   :  { %v1734_v23 = vmin.f32 %v1726_v7, 16.0  ;;  %v1727_v25 = vadd.f32 2.0, %v2457_v31  ;;  %v1728_v27 = vadd.f32 2.0, %v2476_v35  ;;  %v1729_v28 = vadd.f32 2.0, %v2494_v43  ;;  %vm1415_vm12 = vmand %vm1325_vm5, %vm1395_vm8 }
  0x56   :  { %1094 = vperm.xlu1 %2246, %v1047_v6   ;;  %v2642_v6 = vrot.slane %v1733_v2, %v2424_v12  ;;  %v2651_v9 = vrot.slane %v561_v4, %v2424_v12  ;;  %v255_v29 = vsel %vm239_vm7, 1, %v2353_v1  ;;  %vm1396_vm11 = vcmp.lt.f32.partialorder %v2428_v16, %v1362_v63 }
  0x57   :  { %v2669_v30 = vrot.slane %v1734_v23, %v2424_v12  ;;  %v1736_v37 = vmin.f32 %v1728_v27, 16.0  ;;  %v1737_v38 = vmin.f32 %v1729_v28, 16.0  ;;  %v256_v13 = vsel %vm240_vm9, 1, %v2353_v1  ;;  %vm1416_vm14 = vmand %vm1326_vm10, %vm1396_vm11 }
  0x58   :  { %264 = vperm.xlu0 %2245, %v247_v15   ;;  %v194_v15 = vrot.slane %v160_v60, %v2424_v12  ;;  %v1366_v39 = vrot.slane %v1338_v17, %v2424_v12  ;;  %v1331_v18 = vadd.f32 1.0, %v2437_v20  ;;  %v2355_v51 = vmov 0.0  }
  0x59   :  { %v2688_v44 = vrot.slane %v1736_v37, %v2424_v12  ;;  %v2693_v49 = vrot.slane %v1737_v38, %v2424_v12  ;;  %2198 = vmatprep.subr.bf16.mxu0 %v2355_v51  ;;  %v154_v54 = vadd.f32 -2.0, %v2494_v43  ;;  %2182 = vmatprep.subr.bf16.mxu1 %v2355_v51  ;;  %vm2356_vm9 = vmmov 0  }
  0x5a   :  { %267 = vperm.xlu1 %2246, %v248_v21   ;;  %v153_v21 = vadd.f32 -2.0, %v2476_v35  ;;  %vm221_vm13 = vcmp.lt.f32.partialorder %v2422_v11, %v194_v15  ;;  %vm222_vm15 = vcmp.lt.f32.partialorder %v2428_v16, %v194_v15  ;;  %vm1397_vm3 = vcmp.lt.f32.partialorder %v2422_v11, %v1366_v39  ;;  %2202 = vmatprep.mubr.msk.bf16.mxu0 %vm2356_vm9, %v2355_v51 }
  0x5b   :  { %vm241_vm2 = vmand %vm145_vm0, %vm221_vm13  ;;  %v1339_v53 = vmin.f32 %v1331_v18, 16.0  ;;  %vm1398_vm6 = vcmp.lt.f32.partialorder %v2428_v16, %v1366_v39  ;;  %v162_v59 = vmin.f32 %v154_v54, 14.0  ;;  %v1332_v60 = vadd.f32 1.0, %v2457_v31  ;;  %2186 = vmatprep.mubr.msk.bf16.mxu1 %vm2356_vm9, %v2355_v51  ;;  %v2250_v39 = vld [vmem:[#allocation5] sm:$0xff]  }
  0x5c   :  { %270 = vperm.xlu0 %2245, %v249_v24   ;;  %v562_v24 = vmin.f32 %v554_v8, 15.0  ;;  %v161_v33 = vmin.f32 %v153_v21, 14.0  ;;  %vm242_vm4 = vmand %vm146_vm1, %vm222_vm15  ;;  %v257_v56 = vsel %vm241_vm2, 1, %v2353_v1  ;;  %v1333_v31 = vadd.f32 1.0, %v2476_v35  ;;  %2183 = vmatpush3.bf16.msra.mxu1 %v2250_v39 }
  0x5d   :  { %vm1417_vm7 = vmand %vm1325_vm5, %vm1397_vm3  ;;  %v1370_v58 = vrot.slane %v1339_v53, %v2424_v12  ;;  %v1340_v63 = vmin.f32 %v1332_v60, 16.0  ;;  %v1334_v35 = vadd.f32 1.0, %v2494_v43  ;;  %2184 = vmatprep.subr.bf16.mxu1 %v2355_v51 }
  0x5e   :  { %273 = vperm.xlu1 %2246, %v250_v34   ;;  %v2672_v32 = vrot.slane %v562_v24, %v2424_v12  ;;  %v1735_v34 = vmin.f32 %v1727_v25, 16.0  ;;  %v198_v20 = vrot.slane %v161_v33, %v2424_v12  ;;  %vm1418_vm11 = vmand %vm1326_vm10, %vm1398_vm6  ;;  %v1433_v61 = vsel %vm1417_vm7, 1, %v2353_v1 }
  0x5f   :  { %v1434_v62 = vsel %vm1418_vm11, 1, %v2353_v1  ;;  %vm1400_vm2 = vcmp.lt.f32.partialorder %v2428_v16, %v1370_v58  ;;  %v1341_v4 = vmin.f32 %v1333_v31, 16.0 }
  0x60   :  { %276 = vperm.xlu0 %2245, %v251_v40   ;;  %v2248_v40 = vld [vmem:[#allocation5 + $0x20] sm:$0xff]   ;;  %v2685_v41 = vrot.slane %v1735_v34, %v2424_v12  ;;  %vm223_vm8 = vcmp.lt.f32.partialorder %v2422_v11, %v198_v20  ;;  %vm1420_vm6 = vmand %vm1326_vm10, %vm1400_vm2 }
  0x61   :  { %2199 = vmatpush3.bf16.msra.mxu0 %v2248_v40  ;;  %vm243_vm13 = vmand %vm145_vm0, %vm223_vm8  ;;  %v1436_v43 = vsel %vm1420_vm6, 1, %v2353_v1  ;;  %v1378_v8 = vrot.slane %v1341_v4, %v2424_v12  ;;  %v2251_v40 = vld [vmem:[#allocation5 + $0x8] sm:$0xff]  }
  0x62   :  { %279 = vperm.xlu1 %2246, %v252_v48   ;;  %v1431_v48 = vsel %vm1415_vm12, 1, %v2353_v1  ;;  %2200 = vmatprep.subr.bf16.mxu0 %v2355_v51  ;;  %vm224_vm12 = vcmp.lt.f32.partialorder %v2428_v16, %v198_v20  ;;  %v259_v0 = vsel %vm243_vm13, 1, %v2353_v1  ;;  %v2881_v20 = vld [vmem:[#allocation2] sm:$0xf] }
  0x63   :  { %vm244_vm15 = vmand %vm146_vm1, %vm224_vm12  ;;  %2185 = vmatpush3.bf16.msra.mxu1 %v2251_v40 }
  0x64   :  { %282 = vperm.xlu0 %2245, %v253_v52   ;;  %v1432_v52 = vsel %vm1416_vm14, 1, %v2353_v1  ;;  %vm1399_vm14 = vcmp.lt.f32.partialorder %v2422_v11, %v1370_v58  ;;  %v260_v2 = vsel %vm244_vm15, 1, %v2353_v1  ;;  %vm1403_vm15 = vcmp.lt.f32.partialorder %v2422_v11, %v1378_v8  ;;  %2190 = vmatprep.subr.bf16.mxu1 %v2355_v51 }
  0x65   :  { %2201 = vmatpush3.bf16.msra.mxu0 %v2249_v55  ;;  %vm1419_vm3 = vmand %vm1325_vm5, %vm1399_vm14 }
  0x66   :  { %285 = vperm.xlu1 %2246, %v254_v57   ;;  %v258_v57 = vsel %vm242_vm4, 1, %v2353_v1  ;;  %2206 = vmatprep.subr.bf16.mxu0 %v2355_v51  ;;  %v1435_v7 = vsel %vm1419_vm3, 1, %v2353_v1  ;;  %vm1404_vm3 = vcmp.lt.f32.partialorder %v2428_v16, %v1378_v8 }
  0x68   :  { %1444 = vperm.xlu0 %2245, %v1427_v19   ;;  %v202_v19 = vrot.slane %v162_v59, %v2424_v12 }
  0x6a   :  { %1447 = vperm.xlu1 %2246, %v1428_v3   ;;  %vm225_vm4 = vcmp.lt.f32.partialorder %v2422_v11, %v202_v19  ;;  %v1374_v3 = vrot.slane %v1340_v63, %v2424_v12  ;;  %vm226_vm7 = vcmp.lt.f32.partialorder %v2428_v16, %v202_v19 }
  0x6b   :  { %vm245_vm8 = vmand %vm145_vm0, %vm225_vm4 }
  0x6c   :  { %1450 = vperm.xlu0 %2245, %v1429_v10   ;;  %vm1401_vm11 = vcmp.lt.f32.partialorder %v2422_v11, %v1374_v3  ;;  %v1342_v10 = vmin.f32 %v1334_v35, 16.0  ;;  %vm246_vm12 = vmand %vm146_vm1, %vm226_vm7  ;;  %v261_v15 = vsel %vm245_vm8, 1, %v2353_v1  ;;  %vm1402_vm13 = vcmp.lt.f32.partialorder %v2428_v16, %v1374_v3  ;;  %v2936_v35 = vld [vmem:[#allocation2 + $0xc] sm:$0xf] }
  0x6d   :  { %vm1421_vm14 = vmand %vm1325_vm5, %vm1401_vm11  ;;  %v262_v17 = vsel %vm246_vm12, 1, %v2353_v1  ;;  %vm611_vm12 = vcmp.lt.f32.partialorder %v2422_v11, %v2553_v14 }
  0x6e   :  { %1453 = vperm.xlu1 %2246, %v1430_v22   ;;  %v1382_v21 = vrot.slane %v1342_v10, %v2424_v12  ;;  %vm1422_vm2 = vmand %vm1326_vm10, %vm1402_vm13  ;;  %v1437_v22 = vsel %vm1421_vm14, 1, %v2353_v1  ;;  %vm612_vm14 = vcmp.lt.f32.partialorder %v2428_v16, %v2553_v14  ;;  %v2953_v10 = vld [vmem:[#allocation2 + $0x10] sm:$0xf] }
  0x6f   :  { %vm1423_vm4 = vmand %vm1325_vm5, %vm1403_vm15  ;;  %v1438_v23 = vsel %vm1422_vm2, 1, %v2353_v1 }
  0x70   :  { %288 = vperm.xlu0 %2245, %v255_v29   ;;  %vm1405_vm6 = vcmp.lt.f32.partialorder %v2422_v11, %v1382_v21  ;;  %vm1424_vm7 = vmand %vm1326_vm10, %vm1404_vm3  ;;  %v1439_v12 = vsel %vm1423_vm4, 1, %v2353_v1  ;;  %vm1406_vm8 = vcmp.lt.f32.partialorder %v2428_v16, %v1382_v21  ;;  %vm615_vm4 = vcmp.lt.f32.partialorder %v2422_v11, %v2589_v42 }
  0x71   :  { %vm1425_vm11 = vmand %vm1325_vm5, %vm1405_vm6  ;;  %v1440_v24 = vsel %vm1424_vm7, 1, %v2353_v1  ;;  %vm613_vm5 = vcmp.lt.f32.partialorder %v2422_v11, %v2578_v36  ;;  %vm616_vm7 = vcmp.lt.f32.partialorder %v2428_v16, %v2589_v42 }
  0x72   :  { %291 = vperm.xlu1 %2246, %v256_v13   ;;  %vm1426_vm13 = vmand %vm1326_vm10, %vm1406_vm8  ;;  %v1441_v25 = vsel %vm1425_vm11, 1, %v2353_v1  ;;  %vm614_vm10 = vcmp.lt.f32.partialorder %v2428_v16, %v2578_v36  ;;  %vm617_vm11 = vcmp.lt.f32.partialorder %v2422_v11, %v2596_v45 }
  0x73   :  { %vm627_vm15 = vmand %vm145_vm0, %vm611_vm12  ;;  %v1442_v27 = vsel %vm1426_vm13, 1, %v2353_v1  ;;  %vm618_vm13 = vcmp.lt.f32.partialorder %v2428_v16, %v2596_v45 }
  0x74   :  { %1456 = vperm.xlu0 %2245, %v1431_v48   ;;  %vm628_vm2 = vmand %vm146_vm1, %vm612_vm14  ;;  %v643_v28 = vsel %vm627_vm15, 1, %v2353_v1  ;;  %vm1720_vm15 = vcmp.ge.f32.partialorder %v2422_v11, 2.0 }
  0x75   :  { %vm629_vm3 = vmand %vm145_vm0, %vm613_vm5  ;;  %v644_v14 = vsel %vm628_vm2, 1, %v2353_v1  ;;  %vm1786_vm5 = vcmp.lt.f32.partialorder %v2422_v11, %v2599_v46 }
  0x76   :  { %1459 = vperm.xlu1 %2246, %v1432_v52   ;;  %vm630_vm6 = vmand %vm146_vm1, %vm614_vm10  ;;  %v645_v29 = vsel %vm629_vm3, 1, %v2353_v1  ;;  %vm1721_vm10 = vcmp.ge.f32.partialorder %v2428_v16, 2.0  ;;  %vm1787_vm3 = vcmp.lt.f32.partialorder %v2428_v16, %v2599_v46 }
  0x77   :  { %vm631_vm8 = vmand %vm145_vm0, %vm615_vm4  ;;  %v646_v36 = vsel %vm630_vm6, 1, %v2353_v1  ;;  %vm1788_vm6 = vcmp.lt.f32.partialorder %v2422_v11, %v2602_v47 }
  0x78   :  { %294 = vperm.xlu0 %2245, %v257_v56   ;;  %vm632_vm12 = vmand %vm146_vm1, %vm616_vm7  ;;  %v647_v33 = vsel %vm631_vm8, 1, %v2353_v1  ;;  %vm1789_vm8 = vcmp.lt.f32.partialorder %v2428_v16, %v2602_v47  ;;  %v2902_v56 = vld [vmem:[#allocation2 + $0x8] sm:$0xf] }
  0x79   :  { %vm633_vm14 = vmand %vm145_vm0, %vm617_vm11  ;;  %v648_v42 = vsel %vm632_vm12, 1, %v2353_v1  ;;  %vm619_vm12 = vcmp.lt.f32.partialorder %v2422_v11, %v2608_v50 }
  0x7a   :  { %297 = vperm.xlu1 %2246, %v258_v57   ;;  %vm634_vm2 = vmand %vm146_vm1, %vm618_vm13  ;;  %v649_v34 = vsel %vm633_vm14, 1, %v2353_v1  ;;  %vm620_vm14 = vcmp.lt.f32.partialorder %v2428_v16, %v2608_v50 }
  0x7b   :  { %vm1806_vm4 = vmand %vm1720_vm15, %vm1786_vm5  ;;  %v650_v45 = vsel %vm634_vm2, 1, %v2353_v1  ;;  %vm1790_vm2 = vcmp.lt.f32.partialorder %v2422_v11, %v2636_v26 }
  0x7c   :  { %1462 = vperm.xlu0 %2245, %v1433_v61   ;;  %vm1807_vm7 = vmand %vm1721_vm10, %vm1787_vm3  ;;  %v1822_v37 = vsel %vm1806_vm4, 1, %v2353_v1  ;;  %vm1791_vm4 = vcmp.lt.f32.partialorder %v2428_v16, %v2636_v26  ;;  %v2920_v61 = vld [vmem:[#allocation2 + $0x4] sm:$0xf] }
  0x7d   :  { %vm1808_vm11 = vmand %vm1720_vm15, %vm1788_vm6  ;;  %v1823_v46 = vsel %vm1807_vm7, 1, %v2353_v1  ;;  %vm621_vm7 = vcmp.lt.f32.partialorder %v2422_v11, %v2639_v5 }
  0x7e   :  { %1465 = vperm.xlu1 %2246, %v1434_v62   ;;  %vm1809_vm13 = vmand %vm1721_vm10, %vm1789_vm8  ;;  %v1824_v38 = vsel %vm1808_vm11, 1, %v2353_v1  ;;  %vm622_vm11 = vcmp.lt.f32.partialorder %v2428_v16, %v2639_v5 }
  0x7f   :  { %vm635_vm5 = vmand %vm145_vm0, %vm619_vm12  ;;  %v1825_v47 = vsel %vm1809_vm13, 1, %v2353_v1  ;;  %vm1792_vm13 = vcmp.lt.f32.partialorder %v2422_v11, %v2642_v6 }
  0x80   :  { %300 = vperm.xlu0 %2245, %v259_v0   ;;  %vm636_vm3 = vmand %vm146_vm1, %vm620_vm14  ;;  %v651_v13 = vsel %vm635_vm5, 1, %v2353_v1  ;;  %vm1793_vm5 = vcmp.lt.f32.partialorder %v2428_v16, %v2642_v6 }
  0x81   :  { %vm1810_vm6 = vmand %vm1720_vm15, %vm1790_vm2  ;;  %v652_v50 = vsel %vm636_vm3, 1, %v2353_v1  ;;  %vm623_vm2 = vcmp.lt.f32.partialorder %v2422_v11, %v2651_v9 }
  0x82   :  { %303 = vperm.xlu1 %2246, %v260_v2   ;;  %vm1811_vm8 = vmand %vm1721_vm10, %vm1791_vm4  ;;  %v1826_v18 = vsel %vm1810_vm6, 1, %v2353_v1  ;;  %vm624_vm6 = vcmp.lt.f32.partialorder %v2428_v16, %v2651_v9 }
  0x83   :  { %vm637_vm12 = vmand %vm145_vm0, %vm621_vm7  ;;  %v1827_v26 = vsel %vm1811_vm8, 1, %v2353_v1 }
  0x84   :  { %1468 = vperm.xlu0 %2245, %v1435_v7   ;;  %vm638_vm14 = vmand %vm146_vm1, %vm622_vm11  ;;  %v653_v5 = vsel %vm637_vm12, 1, %v2353_v1  ;;  %vm1794_vm12 = vcmp.lt.f32.partialorder %v2422_v11, %v2669_v30 }
  0x85   :  { %vm1812_vm3 = vmand %vm1720_vm15, %vm1792_vm13  ;;  %v654_v52 = vsel %vm638_vm14, 1, %v2353_v1 }
  0x86   :  { %1471 = vperm.xlu1 %2246, %v1436_v43   ;;  %vm2886_vm4 = vmand %vm1721_vm10, %vm1793_vm5  ;;  %v1828_v57 = vsel %vm1812_vm3, 1, %v2353_v1 }
  0x87   :  { %vm2894_vm8 = vmand %vm145_vm0, %vm623_vm2  ;;  %v1829_v31 = vsel %vm2886_vm4, 1, %v2353_v1  ;;  %vm1795_vm2 = vcmp.lt.f32.partialorder %v2428_v16, %v2669_v30  ;;  %vm625_vm4 = vcmp.lt.f32.partialorder %v2422_v11, %v2672_v32 }
  0x88   :  { %306 = vperm.xlu0 %2245, %v261_v15   ;;  %vm2912_vm14 = vmand %vm146_vm1, %vm624_vm6  ;;  %v655_v2 = vsel %vm2894_vm8, 1, %v2353_v1 }
  0x89   :  { %vm2932_vm6 = vmand %vm1720_vm15, %vm1794_vm12  ;;  %v656_v15 = vsel %vm2912_vm14, 1, %v2353_v1 }
  0x8a   :  { %309 = vperm.xlu1 %2246, %v262_v17   ;;  %vm2949_vm12 = vmand %vm1721_vm10, %vm1795_vm2 }
  0x8b   :  { %vm2966_vm2 = vmand %vm145_vm0, %vm625_vm4 }
  0x8c   :  { %1474 = vperm.xlu0 %2245, %v1437_v22   ;;  %v657_v39 = vsel %vm2966_vm2, 1, %v2353_v1 }
  0x8e   :  { %1477 = vperm.xlu1 %2246, %v1438_v23  }
  0x90   :  { %1480 = vperm.xlu0 %2245, %v1439_v12  }
  0x92   :  { %1483 = vperm.xlu1 %2246, %v1440_v24   ;;  %v2974_v24 = vld [vmem:[#allocation2 + $0x14] sm:$0xf] }
  0x94   :  { %1486 = vperm.xlu0 %2245, %v1441_v25   ;;  %v1830_v25 = vsel %vm2932_vm6, 1, %v2353_v1 }
  0x96   :  { %1489 = vperm.xlu1 %2246, %v1442_v27  }
  0x98   :  { %660 = vperm.xlu0 %2245, %v643_v28  }
  0x9a   :  { %663 = vperm.xlu1 %2246, %v644_v14  }
  0x9c   :  { %666 = vperm.xlu0 %2245, %v645_v29  }
  0x9e   :  { %669 = vperm.xlu1 %2246, %v646_v36  }
  0xa0   :  { %672 = vperm.xlu0 %2245, %v647_v33  }
  0xa2   :  { %675 = vperm.xlu1 %2246, %v648_v42  }
  0xa4   :  { %678 = vperm.xlu0 %2245, %v649_v34   ;;  %v2993_v34 = vld [vmem:[#allocation2 + $0x20] sm:$0xf] }
  0xa6   :  { %681 = vperm.xlu1 %2246, %v650_v45  }
  0xa8   :  { %1839 = vperm.xlu0 %2245, %v1822_v37  }
  0xaa   :  { %1842 = vperm.xlu1 %2246, %v1823_v46  }
  0xac   :  { %1845 = vperm.xlu0 %2245, %v1824_v38  }
  0xae   :  { %1848 = vperm.xlu1 %2246, %v1825_v47  }
  0xb0   :  { %684 = vperm.xlu0 %2245, %v651_v13  }
  0xb2   :  { %687 = vperm.xlu1 %2246, %v652_v50   ;;  %v3008_v50 = vld [vmem:[#allocation2 + $0x24] sm:$0xf] }
  0xb4   :  { %1851 = vperm.xlu0 %2245, %v1826_v18  }
  0xb6   :  { %1854 = vperm.xlu1 %2246, %v1827_v26  }
  0xb7   :  { %v1050_v48 = vpop.permute.xlu0 %1049 }
  0xb8   :  { %vm1096_vm7 = vcmp.eq.s32.totalorder %v1050_v48, 1  ;;  %690 = vperm.xlu0 %2245, %v653_v5  }
  0xb9   :  { %vm2898_vm11 = vmpackc.low %vm1096_vm7, %vm1096_vm7  ;;  %v1056_v55 = vpop.permute.xlu1 %1055 }
  0xba   :  { %v1128_v9 = vsel %vm2898_vm11, %v2881_v20, 0  ;;  %vm1098_vm13 = vcmp.eq.s32.totalorder %v1056_v55, 1  ;;  %693 = vperm.xlu1 %2246, %v654_v52   ;;  %vm375_vm11 = vcmask 261120  }
  0xbb   :  { %vm2916_vm5 = vmpackc.low %vm1098_vm13, %vm1098_vm13  ;;  %v1053_v60 = vpop.permute.xlu0 %1052  ;;  %v1144_v63 = vunpack.c.l.bf16 %v1128_v9  ;;  %v3033_v9 = vld [vmem:[#allocation2 + $0x18] sm:$0xf] }
  0xbc   :  { %v1130_v62 = vsel %vm2916_vm5, %v2902_v56, 0  ;;  %vm1097_vm3 = vcmp.eq.s32.totalorder %v1053_v60, 1  ;;  %1857 = vperm.xlu0 %2245, %v1828_v57   ;;  %vm626_vm5 = vcmp.lt.f32.partialorder %v2428_v16, %v2672_v32  ;;  %v1831_v32 = vsel %vm2949_vm12, 1, %v2353_v1 }
  0xbd   :  { %vm1113_vm7 = vmpackc.low %vm1097_vm3, %vm1097_vm3  ;;  %v1059_v0 = vpop.permute.xlu1 %1058  ;;  %v1146_v7 = vunpack.c.l.bf16 %v1130_v62  ;;  %v1160_v21 = vsel %vm375_vm11, %v1144_v63, 0.0  ;;  %vm1798_vm12 = vcmp.lt.f32.partialorder %v2422_v11, %v2688_v44 }
  0xbe   :  { %v1129_v3 = vsel %vm1113_vm7, %v2920_v61, 0  ;;  %vm1099_vm13 = vcmp.eq.s32.totalorder %v1059_v0, 1  ;;  %1860 = vperm.xlu1 %2246, %v1829_v31   ;;  %vm1796_vm7 = vcmp.lt.f32.partialorder %v2422_v11, %v2685_v41  ;;  %vm2985_vm4 = vmand %vm146_vm1, %vm626_vm5 }
  0xbf   :  { %v1145_v43 = vunpack.c.l.bf16 %v1129_v3  ;;  %vm1115_vm8 = vmpackc.low %vm1099_vm13, %vm1099_vm13  ;;  %v1062_v8 = vpop.permute.xlu0 %1061  ;;  %vm1797_vm13 = vcmp.lt.f32.partialorder %v2428_v16, %v2685_v41  ;;  %v1169_v29 = vsel %vm375_vm11, %v1146_v7, 0.0  ;;  %v658_v54 = vsel %vm2985_vm4, 1, %v2353_v1 }
  0xc0   :  { %v1131_v30 = vsel %vm1115_vm8, %v2936_v35, 0  ;;  %vm1100_vm3 = vcmp.eq.s32.totalorder %v1062_v8, 1  ;;  %696 = vperm.xlu0 %2245, %v655_v2   ;;  %vm3004_vm8 = vmand %vm1720_vm15, %vm1796_vm7  ;;  %v3062_v2 = vld [vmem:[#allocation2 + $0x1c] sm:$0xf] }
  0xc1   :  { %v1161_v22 = vsel %vm375_vm11, %v1145_v43, 0.0  ;;  %v1147_v23 = vunpack.c.l.bf16 %v1131_v30  ;;  %vm1116_vm14 = vmpackc.low %vm1100_vm3, %vm1100_vm3  ;;  %v1065_v12 = vpop.permute.xlu1 %1064  ;;  %vm1799_vm3 = vcmp.lt.f32.partialorder %v2428_v16, %v2688_v44  ;;  %v1832_v31 = vsel %vm3004_vm8, 1, %v2353_v1 }
  0xc2   :  { %v1162_v27 = vadd.f32 %v1161_v22, %v1160_v21  ;;  %v1132_v28 = vsel %vm1116_vm14, %v2953_v10, 0  ;;  %vm1101_vm0 = vcmp.eq.s32.totalorder %v1065_v12, 1  ;;  %699 = vperm.xlu1 %2246, %v656_v15   ;;  %vm3023_vm14 = vmand %vm1721_vm10, %vm1797_vm13  ;;  %v3076_v21 = vld [vmem:[#allocation2 + $0x28] sm:$0xf] }
  0xc3   :  { %v1170_v36 = vsel %vm375_vm11, %v1147_v23, 0.0  ;;  %v1148_v33 = vunpack.c.l.bf16 %v1132_v28  ;;  %vm1117_vm6 = vmpackc.low %vm1101_vm0, %vm1101_vm0  ;;  %v1074_v42 = vpop.permute.xlu0 %1073  ;;  %v1833_v44 = vsel %vm3023_vm14, 1, %v2353_v1 }
  0xc4   :  { %v1163_v45 = vrot.slane %v1162_v27, 4  ;;  %v1171_v37 = vadd.f32 %v1170_v36, %v1169_v29  ;;  %v1133_v46 = vsel %vm1117_vm6, %v2974_v24, 0  ;;  %vm1104_vm1 = vcmp.eq.s32.totalorder %v1074_v42, 1  ;;  %1863 = vperm.xlu0 %2245, %v1830_v25   ;;  %vm3040_vm0 = vmand %vm1720_vm15, %vm1798_vm12  ;;  %v3099_v36 = vld [vmem:[#allocation2 + $0x2c] sm:$0xf] }
  0xc5   :  { %v1149_v47 = vunpack.c.l.bf16 %v1133_v46  ;;  %vm1120_vm5 = vmpackc.low %vm1104_vm1, %vm1104_vm1  ;;  %v1077_v13 = vpop.permute.xlu1 %1076  ;;  %v1178_v48 = vsel %vm375_vm11, %v1148_v33, 0.0  ;;  %vm1800_vm6 = vcmp.lt.f32.partialorder %v2422_v11, %v2693_v49  ;;  %vm1801_vm12 = vcmp.lt.f32.partialorder %v2428_v16, %v2693_v49 }
  0xc6   :  { %v1164_v18 = vadd.f32 %v1163_v45, %v1162_v27  ;;  %v1172_v26 = vrot.slane %v1171_v37, 4  ;;  %v1136_v40 = vsel %vm1120_vm5, %v2993_v34, 0  ;;  %vm1105_vm7 = vcmp.eq.s32.totalorder %v1077_v13, 1  ;;  %1866 = vperm.xlu1 %2246, %v1831_v32   ;;  %vm3052_vm4 = vmand %vm1721_vm10, %vm1799_vm3  ;;  %v3120_v13 = vld [vmem:[#allocation2 + $0x30] sm:$0xf] }
  0xc7   :  { %v1179_v52 = vsel %vm375_vm11, %v1149_v47, 0.0  ;;  %v1152_v6 = vunpack.c.l.bf16 %v1136_v40  ;;  %vm1121_vm2 = vmpackc.low %vm1105_vm7, %vm1105_vm7  ;;  %v1068_v53 = vpop.permute.xlu0 %1067  ;;  %v1834_v12 = vsel %vm3040_vm0, 1, %v2353_v1  ;;  %v1835_v33 = vsel %vm3052_vm4, 1, %v2353_v1 }
  0xc8   :  { %v1173_v55 = vadd.f32 %v1172_v26, %v1171_v37  ;;  %v1180_v57 = vadd.f32 %v1179_v52, %v1178_v48  ;;  %v1137_v41 = vsel %vm1121_vm2, %v3008_v50, 0  ;;  %702 = vperm.xlu0 %2245, %v657_v39   ;;  %vm1102_vm13 = vcmp.eq.s32.totalorder %v1068_v53, 1  ;;  %vm3091_vm7 = vmand %vm1720_vm15, %vm1800_vm6 }
  0xc9   :  { %v1153_v59 = vunpack.c.l.bf16 %v1137_v41  ;;  %v1071_v60 = vpop.permute.xlu1 %1070  ;;  %v1165_v19 = vrot.slane %v1164_v18, 2  ;;  %vm3058_vm1 = vmpackc.low %vm1102_vm13, %vm1102_vm13  ;;  %v1196_v4 = vsel %vm375_vm11, %v1152_v6, 0.0  ;;  %v1836_v39 = vsel %vm3091_vm7, 1, %v2353_v1 }
  0xca   :  { %v1181_v63 = vrot.slane %v1180_v57, 4  ;;  %vm1103_vm8 = vcmp.eq.s32.totalorder %v1071_v60, 1  ;;  %705 = vperm.xlu1 %2246, %v658_v54   ;;  %v1174_v3 = vrot.slane %v1173_v55, 2  ;;  %v1134_v43 = vsel %vm3058_vm1, %v3033_v9, 0  ;;  %vm3112_vm2 = vmand %vm1721_vm10, %vm1801_vm12  ;;  %v3141_v60 = vld [vmem:[#allocation2 + $0x34] sm:$0xf] }
  0xcb   :  { %v1197_v7 = vsel %vm375_vm11, %v1153_v59, 0.0  ;;  %vm3072_vm5 = vmpackc.low %vm1103_vm8, %vm1103_vm8  ;;  %v1080_v15 = vpop.permute.xlu0 %1079  ;;  %v1166_v27 = vadd.f32 %v1165_v19, %v1164_v18  ;;  %v1150_v14 = vunpack.c.l.bf16 %v1134_v43  ;;  %v1837_v52 = vsel %vm3112_vm2, 1, %v2353_v1 }
  0xcc   :  { %v1182_v30 = vadd.f32 %v1181_v63, %v1180_v57  ;;  %v1198_v17 = vadd.f32 %v1197_v7, %v1196_v4  ;;  %1869 = vperm.xlu0 %2245, %v1832_v31   ;;  %v1135_v22 = vsel %vm3072_vm5, %v3062_v2, 0  ;;  %vm1106_vm3 = vcmp.eq.s32.totalorder %v1080_v15, 1 }
  0xcd   :  { %v1083_v23 = vpop.permute.xlu1 %1082  ;;  %vm3095_vm14 = vmpackc.low %vm1106_vm3, %vm1106_vm3  ;;  %v1175_v42 = vadd.f32 %v1174_v3, %v1173_v55  ;;  %v1151_v11 = vunpack.c.l.bf16 %v1135_v22  ;;  %v1167_v40 = vrot.slane %v1166_v27, 1  ;;  %v1187_v5 = vsel %vm375_vm11, %v1150_v14, 0.0  ;;  %v3148_v3 = vld [vmem:[#allocation2 + $0x3c] sm:$0xf] }
  0xce   :  { %v1183_v28 = vrot.slane %v1182_v30, 2  ;;  %1872 = vperm.xlu1 %2246, %v1833_v44   ;;  %v1138_v32 = vsel %vm3095_vm14, %v3076_v21, 0  ;;  %vm1107_vm15 = vcmp.eq.s32.totalorder %v1083_v23, 1  ;;  %v1199_v38 = vrot.slane %v1198_v17, 4  ;;  %v3146_v44 = vld [vmem:[#allocation2 + $0x38] sm:$0xf] }
  0xcf   :  { %v1086_v45 = vpop.permute.xlu0 %1085  ;;  %vm3116_vm0 = vmpackc.low %vm1107_vm15, %vm1107_vm15  ;;  %v1188_v49 = vsel %vm375_vm11, %v1151_v11, 0.0  ;;  %v1154_v16 = vunpack.c.l.bf16 %v1138_v32  ;;  %v1176_v6 = vrot.slane %v1175_v42, 1  ;;  %v3144_v19 = vadd.f32 %v1167_v40, %v1166_v27 }
  0xd0   :  { %v1184_v46 = vadd.f32 %v1183_v28, %v1182_v30  ;;  %1875 = vperm.xlu0 %2245, %v1834_v12   ;;  %v1139_v18 = vsel %vm3116_vm0, %v3099_v36, 0  ;;  %vm1108_vm10 = vcmp.eq.s32.totalorder %v1086_v45, 1  ;;  %v1189_v53 = vadd.f32 %v1188_v49, %v1187_v5  ;;  %v2260_v12 = vld [vmem:[%s3704_s1] sm:$0xff] }
  0xd1   :  { %v1089_v26 = vpop.permute.xlu1 %1088  ;;  %vm3130_vm13 = vmpackc.low %vm1108_vm10, %vm1108_vm10  ;;  %v1155_v54 = vunpack.c.l.bf16 %v1139_v18  ;;  %v1200_v58 = vadd.f32 %v1199_v38, %v1198_v17  ;;  %v1205_v59 = vsel %vm375_vm11, %v1154_v16, 0.0  ;;  %v1177_v4 = vadd.f32 %v1176_v6, %v1175_v42 }
  0xd2   :  { %1878 = vperm.xlu1 %2246, %v1835_v33   ;;  %v1140_v55 = vsel %vm3130_vm13, %v3120_v13, 0  ;;  %v1185_v41 = vrot.slane %v1184_v46, 1  ;;  %v1190_v31 = vrot.slane %v1189_v53, 4  ;;  %vm1109_vm4 = vcmp.eq.s32.totalorder %v1089_v26, 1 }
  0xd3   :  { %v1092_v57 = vpop.permute.xlu0 %1091  ;;  %v1206_v62 = vsel %vm375_vm11, %v1155_v54, 0.0  ;;  %v1156_v0 = vunpack.c.l.bf16 %v1140_v55  ;;  %vm1125_vm1 = vmpackc.low %vm1109_vm4, %vm1109_vm4  ;;  %v1201_v17 = vrot.slane %v1200_v58, 2  ;;  %v1232_v29 = vpack.c.bf16 %v3144_v19, %v3144_v19 }
  0xd4   :  { %1881 = vperm.xlu0 %2245, %v1836_v39   ;;  %vm1110_vm6 = vcmp.eq.s32.totalorder %v1092_v57, 1  ;;  %v1207_v63 = vadd.f32 %v1206_v62, %v1205_v59  ;;  %v1191_v7 = vadd.f32 %v1190_v31, %v1189_v53  ;;  %v1141_v43 = vsel %vm1125_vm1, %v3141_v60, 0 }
  0xd5   :  { %v1095_v1 = vpop.permute.xlu1 %1094  ;;  %vm3151_vm8 = vmpackc.low %vm1110_vm6, %vm1110_vm6  ;;  %v1186_v30 = vadd.f32 %v1185_v41, %v1184_v46  ;;  %v1157_v22 = vunpack.c.l.bf16 %v1141_v43  ;;  %vm476_vm7 = vcmask 1041409   ;;  %v1214_v42 = vsel %vm375_vm11, %v1156_v0, 0.0 }
  0xd6   :  { %1884 = vperm.xlu1 %2246, %v1837_v52   ;;  %vm1111_vm5 = vcmp.eq.s32.totalorder %v1095_v1, 1  ;;  %v1208_v25 = vrot.slane %v1207_v63, 4  ;;  %v1142_v27 = vsel %vm3151_vm8, %v3146_v44, 0  ;;  %v1192_v33 = vrot.slane %v1191_v7, 2 }
  0xd7   :  { %v265_v15 = vpop.permute.xlu0 %264  ;;  %vm3155_vm12 = vmpackc.low %vm1111_vm5, %vm1111_vm5  ;;  %v1215_v11 = vsel %vm375_vm11, %v1157_v22, 0.0  ;;  %v1233_v45 = vpack.c.bf16 %v1177_v4, %v1177_v4  ;;  %vm478_vm15 = vcmask 1042434   ;;  %v1158_v46 = vunpack.c.l.bf16 %v1142_v27 }
  0xd8   :  { %135 = vperm.xlu0 %2245, %v2260_v12   ;;  %v1143_v28 = vsel %vm3155_vm12, %v3148_v3, 0  ;;  %vm311_vm3 = vcmp.eq.s32.totalorder %v265_v15, 1  ;;  %v1216_v37 = vadd.f32 %v1215_v11, %v1214_v42  ;;  %v1234_v39 = vpack.c.bf16 %v1186_v30, %v1186_v30 }
  0xd9   :  { %v268_v14 = vpop.permute.xlu1 %267  ;;  %vm3172_vm14 = vmpackc.low %vm311_vm3, %vm311_vm3  ;;  %v1159_v38 = vunpack.c.l.bf16 %v1143_v28  ;;  %v1202_v49 = vadd.f32 %v1201_v17, %v1200_v58  ;;  %v1209_v18 = vadd.f32 %v1208_v25, %v1207_v63  ;;  %v1223_v40 = vsel %vm375_vm11, %v1158_v46, 0.0 }
  0xda   :  { %v343_v16 = vsel %vm3172_vm14, %v2881_v20, 0  ;;  %vm312_vm2 = vcmp.eq.s32.totalorder %v268_v14, 1  ;;  %v1217_v26 = vrot.slane %v1216_v37, 4  ;;  %v1193_v52 = vadd.f32 %v1192_v33, %v1191_v7 }
  0xdb   :  { %v271_v47 = vpop.permute.xlu0 %270  ;;  %v1224_v5 = vsel %vm375_vm11, %v1159_v38, 0.0  ;;  %vm328_vm0 = vmpackc.low %vm312_vm2, %vm312_vm2  ;;  %v359_v53 = vunpack.c.l.bf16 %v343_v16  ;;  %v1254_v55 = vunpack.c.l.b16 %v1233_v45  ;;  %v1255_v59 = vunpack.c.l.b16 %v1234_v39 }
  0xdc   :  { %v1225_v6 = vadd.f32 %v1224_v5, %v1223_v40  ;;  %v344_v54 = vsel %vm328_vm0, %v2920_v61, 0  ;;  %v1218_v57 = vadd.f32 %v1217_v26, %v1216_v37  ;;  %vm313_vm10 = vcmp.eq.s32.totalorder %v271_v47, 1 }
  0xdd   :  { %v274_v48 = vpop.permute.xlu1 %273  ;;  %v360_v41 = vunpack.c.l.bf16 %v344_v54  ;;  %v1203_v31 = vrot.slane %v1202_v49, 1  ;;  %vm329_vm13 = vmpackc.low %vm313_vm10, %vm313_vm10  ;;  %v1210_v1 = vrot.slane %v1209_v18, 2  ;;  %v376_v19 = vsel %vm375_vm11, %v359_v53, 0.0 }
  0xde   :  { %v1226_v62 = vrot.slane %v1225_v6, 4  ;;  %vm314_vm4 = vcmp.eq.s32.totalorder %v274_v48, 1  ;;  %v345_v0 = vsel %vm329_vm13, %v2902_v56, 0  ;;  %v1194_v43 = vrot.slane %v1193_v52, 1 }
  0xdf   :  { %v277_v58 = vpop.permute.xlu0 %276  ;;  %v377_v63 = vsel %vm375_vm11, %v360_v41, 0.0  ;;  %vm3185_vm6 = vmpackc.low %vm314_vm4, %vm314_vm4  ;;  %v1219_v8 = vrot.slane %v1218_v57, 2  ;;  %v1253_v17 = vunpack.c.l.b16 %v1232_v29  ;;  %v361_v22 = vunpack.c.l.bf16 %v345_v0 }
  0xe0   :  { %v1227_v15 = vadd.f32 %v1226_v62, %v1225_v6  ;;  %v378_v30 = vadd.f32 %v377_v63, %v376_v19  ;;  %v346_v23 = vsel %vm3185_vm6, %v2936_v35, 0  ;;  %vm315_vm1 = vcmp.eq.s32.totalorder %v277_v58, 1 }
  0xe1   :  { %v280_v7 = vpop.permute.xlu1 %279  ;;  %v3192_v25 = vadd.f32 %v1203_v31, %v1202_v49  ;;  %vm3194_vm8 = vmpackc.low %vm315_vm1, %vm315_vm1  ;;  %v1261_v14 = vsel %vm476_vm7, %v1254_v55, %v1253_v17  ;;  %v1211_v33 = vadd.f32 %v1210_v1, %v1209_v18  ;;  %v362_v42 = vunpack.c.l.bf16 %v346_v23 }
  0xe2   :  { %v1228_v27 = vrot.slane %v1227_v15, 2  ;;  %v347_v29 = vsel %vm3194_vm8, %v2953_v10, 0  ;;  %v3203_v32 = vsel %vm478_vm15, %v1255_v59, %v1261_v14  ;;  %v1195_v45 = vadd.f32 %v1194_v43, %v1193_v52 }
  0xe3   :  { %v283_v12 = vpop.permute.xlu0 %282  ;;  %v1220_v37 = vadd.f32 %v1219_v8, %v1218_v57  ;;  %v379_v46 = vrot.slane %v378_v30, 4  ;;  %v385_v38 = vsel %vm375_vm11, %v361_v22, 0.0  ;;  %v386_v47 = vsel %vm375_vm11, %v362_v42, 0.0 }
  0xe4   :  { %vm316_vm5 = vcmp.eq.s32.totalorder %v280_v7, 1  ;;  %vm317_vm12 = vcmp.eq.s32.totalorder %v283_v12, 1  ;;  %v1236_v49 = vpack.c.bf16 %v3192_v25, %v3192_v25  ;;  %v1229_v16 = vadd.f32 %v1228_v27, %v1227_v15 }
  0xe5   :  { %v286_v11 = vpop.permute.xlu1 %285  ;;  %v387_v18 = vadd.f32 %v386_v47, %v385_v38  ;;  %v363_v26 = vunpack.c.l.bf16 %v347_v29  ;;  %vm332_vm3 = vmpackc.low %vm316_vm5, %vm316_vm5  ;;  %v1212_v40 = vrot.slane %v1211_v33, 1  ;;  %v1221_v6 = vrot.slane %v1220_v37, 1 }
  0xe6   :  { %v348_v5 = vsel %vm332_vm3, %v2974_v24, 0  ;;  %vm3210_vm14 = vmpackc.low %vm317_vm12, %vm317_vm12  ;;  %vm318_vm2 = vcmp.eq.s32.totalorder %v286_v11, 1  ;;  %v380_v53 = vadd.f32 %v379_v46, %v378_v30  ;;  %vm480_vm13 = vcmask 1043459  }
  0xe7   :  { %v1445_v39 = vpop.permute.xlu0 %1444  ;;  %v388_v54 = vrot.slane %v387_v18, 4  ;;  %v364_v55 = vunpack.c.l.bf16 %v348_v5  ;;  %vm334_vm10 = vmpackc.low %vm318_vm2, %vm318_vm2  ;;  %v1235_v57 = vpack.c.bf16 %v1195_v45, %v1195_v45  ;;  %v349_v41 = vsel %vm3210_vm14, %v3033_v9, 0 }
  0xe8   :  { %vm1491_vm0 = vcmp.eq.s32.totalorder %v1445_v39, 1  ;;  %v350_v58 = vsel %vm334_vm10, %v3062_v2, 0  ;;  %v1230_v62 = vrot.slane %v1229_v16, 1  ;;  %v394_v19 = vsel %vm375_vm11, %v363_v26, 0.0 }
  0xe9   :  { %v1448_v52 = vpop.permute.xlu1 %1447  ;;  %vm3218_vm4 = vmpackc.low %vm1491_vm0, %vm1491_vm0  ;;  %v389_v1 = vadd.f32 %v388_v54, %v387_v18  ;;  %v395_v63 = vsel %vm375_vm11, %v364_v55, 0.0  ;;  %v365_v7 = vunpack.c.l.bf16 %v349_v41  ;;  %v366_v43 = vunpack.c.l.bf16 %v350_v58 }
  0xea   :  { %vm1492_vm6 = vcmp.eq.s32.totalorder %v1448_v52, 1  ;;  %v396_v4 = vadd.f32 %v395_v63, %v394_v19  ;;  %v1523_v8 = vsel %vm3218_vm4, %v2881_v20, 0  ;;  %v1213_v30 = vadd.f32 %v1212_v40, %v1211_v33 }
  0xeb   :  { %v1451_v31 = vpop.permute.xlu0 %1450  ;;  %vm3224_vm1 = vmpackc.low %vm1492_vm6, %vm1492_vm6  ;;  %v1222_v17 = vadd.f32 %v1221_v6, %v1220_v37  ;;  %v381_v22 = vrot.slane %v380_v53, 2  ;;  %v390_v23 = vrot.slane %v389_v1, 2  ;;  %v403_v27 = vsel %vm375_vm11, %v365_v7, 0.0 }
  0xec   :  { %v397_v12 = vrot.slane %v396_v4, 4  ;;  %v404_v28 = vsel %vm375_vm11, %v366_v43, 0.0  ;;  %v1524_v14 = vsel %vm3224_vm1, %v2920_v61, 0  ;;  %vm482_vm8 = vcmask 1044484  }
  0xed   :  { %v1454_v15 = vpop.permute.xlu1 %1453  ;;  %v1231_v29 = vadd.f32 %v1230_v62, %v1229_v16  ;;  %v391_v11 = vadd.f32 %v390_v23, %v389_v1  ;;  %v405_v45 = vadd.f32 %v404_v28, %v403_v27  ;;  %v1539_v20 = vunpack.c.l.bf16 %v1523_v8 }
  0xee   :  { %vm484_vm5 = vcmask 1045509   ;;  %v398_v33 = vadd.f32 %v397_v12, %v396_v4  ;;  %v1540_v37 = vunpack.c.l.bf16 %v1524_v14  ;;  %vm1493_vm12 = vcmp.eq.s32.totalorder %v1451_v31, 1 }
  0xef   :  { %v289_v42 = vpop.permute.xlu0 %288  ;;  %vm1494_vm3 = vcmp.eq.s32.totalorder %v1454_v15, 1  ;;  %vm486_vm14 = vcmask 1046534   ;;  %v1256_v38 = vunpack.c.l.b16 %v1235_v57  ;;  %v1237_v47 = vpack.c.bf16 %v1213_v30, %v1213_v30  ;;  %vm1509_vm2 = vmpackc.low %vm1493_vm12, %vm1493_vm12 }
  0xf0   :  { %v406_v39 = vrot.slane %v405_v45, 4  ;;  %vm319_vm0 = vcmp.eq.s32.totalorder %v289_v42, 1  ;;  %vm488_vm10 = vcmask 1047559   ;;  %v1238_v61 = vpack.c.bf16 %v1222_v17, %v1222_v17  ;;  %vm3238_vm4 = vmpackc.low %vm1494_vm3, %vm1494_vm3 }
  0xf1   :  { %v292_v46 = vpop.permute.xlu1 %291  ;;  %v1556_v18 = vsel %vm375_vm11, %v1540_v37, 0.0  ;;  %v1525_v16 = vsel %vm1509_vm2, %v2902_v56, 0  ;;  %v1239_v5 = vpack.c.bf16 %v1231_v29, %v1231_v29  ;;  %v382_v48 = vadd.f32 %v381_v22, %v380_v53  ;;  %vm335_vm1 = vmpackc.low %vm319_vm0, %vm319_vm0 }
  0xf2   :  { %vm320_vm6 = vcmp.eq.s32.totalorder %v292_v46, 1  ;;  %v399_v52 = vrot.slane %v398_v33, 2  ;;  %v1555_v6 = vsel %vm375_vm11, %v1539_v20, 0.0  ;;  %v392_v54 = vrot.slane %v391_v11, 1 }
  0xf3   :  { %v1457_v40 = vpop.permute.xlu0 %1456  ;;  %v1541_v55 = vunpack.c.l.bf16 %v1525_v16  ;;  %v1526_v57 = vsel %vm3238_vm4, %v2936_v35, 0  ;;  %v351_v56 = vsel %vm335_vm1, %v2993_v34, 0  ;;  %vm336_vm12 = vmpackc.low %vm320_vm6, %vm320_vm6  ;;  %v1257_v58 = vunpack.c.l.b16 %v1236_v49 }
  0xf4   :  { %v1263_v53 = vsel %vm480_vm13, %v1256_v38, %v3203_v32  ;;  %v407_v59 = vadd.f32 %v406_v39, %v405_v45  ;;  %v1557_v31 = vadd.f32 %v1556_v18, %v1555_v6  ;;  %v1258_v62 = vunpack.c.l.b16 %v1237_v47 }
  0xf5   :  { %v1460_v41 = vpop.permute.xlu1 %1459  ;;  %v1542_v1 = vunpack.c.l.bf16 %v1526_v57  ;;  %v367_v19 = vunpack.c.l.bf16 %v351_v56  ;;  %v352_v63 = vsel %vm336_vm12, %v3008_v50, 0  ;;  %v1259_v35 = vunpack.c.l.b16 %v1238_v61  ;;  %v2252_v61 = vld [vmem:[#allocation5 + $0x30] sm:$0xff]  }
  0xf6   :  { %v383_v4 = vrot.slane %v382_v48, 1  ;;  %v400_v7 = vadd.f32 %v399_v52, %v398_v33  ;;  %v368_v43 = vunpack.c.l.bf16 %v352_v63  ;;  %v1260_v8 = vunpack.c.l.b16 %v1239_v5 }
  0xf7   :  { %v295_v0 = vpop.permute.xlu0 %294  ;;  %v393_v15 = vadd.f32 %v392_v54, %v391_v11  ;;  %v1564_v25 = vsel %vm375_vm11, %v1541_v55, 0.0  ;;  %v1565_v49 = vsel %vm375_vm11, %v1542_v1, 0.0  ;;  %v408_v32 = vrot.slane %v407_v59, 2 }
  0xf8   :  { %v1558_v17 = vrot.slane %v1557_v31, 4  ;;  %v1566_v22 = vadd.f32 %v1565_v49, %v1564_v25  ;;  %v1264_v23 = vsel %vm482_vm8, %v1257_v58, %v1263_v53  ;;  %v412_v12 = vsel %vm375_vm11, %v367_v19, 0.0 }
  0xf9   :  { %v298_v30 = vpop.permute.xlu1 %297  ;;  %v413_v27 = vsel %vm375_vm11, %v368_v43, 0.0  ;;  %v1265_v28 = vsel %vm484_vm5, %v1258_v62, %v1264_v23  ;;  %vm1495_vm3 = vcmp.eq.s32.totalorder %v1457_v40, 1  ;;  %v401_v42 = vrot.slane %v400_v7, 1 }
  0xfa   :  { %v1567_v29 = vrot.slane %v1566_v22, 4  ;;  %v414_v11 = vadd.f32 %v413_v27, %v412_v12  ;;  %v1266_v45 = vsel %vm486_vm14, %v1259_v35, %v1265_v28  ;;  %vm1511_vm2 = vmpackc.low %vm1495_vm3, %vm1495_vm3  ;;  %v384_v20 = vadd.f32 %v383_v4, %v382_v48 }
  0xfb   :  { %v1463_v14 = vpop.permute.xlu0 %1462  ;;  %v1267_v33 = vsel %vm488_vm10, %v1260_v8, %v1266_v45  ;;  %v1527_v37 = vsel %vm1511_vm2, %v2953_v10, 0  ;;  %vm1496_vm0 = vcmp.eq.s32.totalorder %v1460_v41, 1  ;;  %v449_v38 = vpack.c.bf16 %v393_v15, %v393_v15 }
  0xfc   :  { %v409_v47 = vadd.f32 %v408_v32, %v407_v59  ;;  %v1559_v39 = vadd.f32 %v1558_v17, %v1557_v31  ;;  %vm1512_vm4 = vmpackc.low %vm1496_vm0, %vm1496_vm0  ;;  %v1268_v18 = vpack.c.b16 %v1267_v33, %v1267_v33  ;;  %v1543_v16 = vunpack.c.l.bf16 %v1527_v37 }
  0xfd   :  { %v1466_v46 = vpop.permute.xlu1 %1465  ;;  %v1528_v26 = vsel %vm1512_vm4, %v2974_v24, 0  ;;  %v402_v5 = vadd.f32 %v401_v42, %v400_v7  ;;  %v1568_v52 = vadd.f32 %v1567_v29, %v1566_v22  ;;  %v415_v6 = vrot.slane %v414_v11, 4  ;;  %v2253_v24 = vld [vmem:[#allocation5 + $0x38] sm:$0xff]  }
  0xfe   :  { %v448_v48 = vpack.c.bf16 %v384_v20, %v384_v20  ;;  %2203 = vmatmul.mubr.msk.bf16.vlgmr.msra.gmra.mrb[0].mxu0 %vm375_vm11, %v1268_v18  ;;  %v1544_v54 = vunpack.c.l.bf16 %v1528_v26  ;;  %vm321_vm6 = vcmp.eq.s32.totalorder %v295_v0, 1  ;;  %vm322_vm1 = vcmp.eq.s32.totalorder %v298_v30, 1 }
  0xff   :  { %v301_v40 = vpop.permute.xlu0 %300  ;;  %v469_v55 = vunpack.c.l.b16 %v449_v38  ;;  %v410_v57 = vrot.slane %v409_v47, 1  ;;  %v1560_v56 = vrot.slane %v1559_v39, 2  ;;  %v1573_v41 = vsel %vm375_vm11, %v1543_v16, 0.0  ;;  %vm3265_vm12 = vmpackc.low %vm321_vm6, %vm321_vm6  ;;  %2207 = vmatpush3.bf16.msra.mxu0 %v2252_v61  ;;  %2210 = vmatprep.mubr.msk.bf16.mxu0 %vm2356_vm9, %v2355_v51 }
 0x100   :  { %v1574_v53 = vsel %vm375_vm11, %v1544_v54, 0.0  ;;  %v353_v59 = vsel %vm3265_vm12, %v3076_v21, 0  ;;  %vm3275_vm3 = vmpackc.low %vm322_vm1, %vm322_vm1  ;;  %vm1497_vm2 = vcmp.eq.s32.totalorder %v1463_v14, 1  ;;  %vm1498_vm0 = vcmp.eq.s32.totalorder %v1466_v46, 1  ;;  %2208 = vmatprep.subr.bf16.mxu0 %v2355_v51 }
 0x101   :  { %v304_v10 = vpop.permute.xlu1 %303  ;;  %v450_v1 = vpack.c.bf16 %v402_v5, %v402_v5  ;;  %v1569_v19 = vrot.slane %v1568_v52, 2  ;;  %v416_v63 = vadd.f32 %v415_v6, %v414_v11  ;;  %v1575_v0 = vadd.f32 %v1574_v53, %v1573_v41  ;;  %vm1513_vm4 = vmpackc.low %vm1497_vm2, %vm1497_vm2 }
 0x102   :  { %v369_v35 = vunpack.c.l.bf16 %v353_v59  ;;  %v354_v4 = vsel %vm3275_vm3, %v3099_v36, 0  ;;  %v1529_v7 = vsel %vm1513_vm4, %v3033_v9, 0  ;;  %vm3284_vm6 = vmpackc.low %vm1498_vm0, %vm1498_vm0  ;;  %vm323_vm1 = vcmp.eq.s32.totalorder %v301_v40, 1 }
 0x103   :  { %v1469_v62 = vpop.permute.xlu0 %1468  ;;  %v1561_v15 = vadd.f32 %v1560_v56, %v1559_v39  ;;  %v1576_v25 = vrot.slane %v1575_v0, 4  ;;  %v370_v49 = vunpack.c.l.bf16 %v354_v4  ;;  %2209 = vmatpush3.bf16.msra.mxu0 %v2253_v24  ;;  %v468_v30 = vunpack.c.l.b16 %v448_v48  ;;  %vm3293_vm12 = vmpackc.low %vm323_vm1, %vm323_vm1 }
 0x104   :  { %v3288_v32 = vadd.f32 %v410_v57, %v409_v47  ;;  %v1545_v17 = vunpack.c.l.bf16 %v1529_v7  ;;  %v1530_v22 = vsel %vm3284_vm6, %v3062_v2, 0  ;;  %2214 = vmatprep.subr.bf16.mxu0 %v2355_v51  ;;  %v1570_v12 = vadd.f32 %v1569_v19, %v1568_v52 }
 0x105   :  { %v1472_v8 = vpop.permute.xlu1 %1471  ;;  %v417_v27 = vrot.slane %v416_v63, 2  ;;  %v421_v28 = vsel %vm375_vm11, %v369_v35, 0.0  ;;  %v422_v14 = vsel %vm375_vm11, %v370_v49, 0.0  ;;  %v477_v42 = vsel %vm476_vm7, %v469_v55, %v468_v30 }
 0x106   :  { %v470_v29 = vunpack.c.l.b16 %v450_v1  ;;  %v423_v11 = vadd.f32 %v422_v14, %v421_v28  ;;  %v1546_v45 = vunpack.c.l.bf16 %v1530_v22  ;;  %v1562_v2 = vrot.slane %v1561_v15, 1 }
 0x107   :  { %v307_v23 = vpop.permute.xlu0 %306  ;;  %v1577_v33 = vadd.f32 %v1576_v25, %v1575_v0  ;;  %v355_v37 = vsel %vm3293_vm12, %v3120_v13, 0  ;;  %vm324_vm3 = vcmp.eq.s32.totalorder %v304_v10, 1  ;;  %v1582_v38 = vsel %vm375_vm11, %v1545_v17, 0.0 }
 0x108   :  { %v424_v46 = vrot.slane %v423_v11, 4  ;;  %v1583_v47 = vsel %vm375_vm11, %v1546_v45, 0.0  ;;  %vm3306_vm2 = vmpackc.low %vm324_vm3, %vm324_vm3  ;;  %vm1499_vm0 = vcmp.eq.s32.totalorder %v1469_v62, 1  ;;  %v451_v18 = vpack.c.bf16 %v3288_v32, %v3288_v32 }
 0x109   :  { %v310_v20 = vpop.permute.xlu1 %309  ;;  %v1571_v16 = vrot.slane %v1570_v12, 1  ;;  %v418_v26 = vadd.f32 %v417_v27, %v416_v63  ;;  %v1584_v40 = vadd.f32 %v1583_v47, %v1582_v38  ;;  %v371_v52 = vunpack.c.l.bf16 %v355_v37  ;;  %vm3315_vm4 = vmpackc.low %vm1499_vm0, %vm1499_vm0 }
 0x10a   :  { %v425_v5 = vadd.f32 %v424_v46, %v423_v11  ;;  %v356_v6 = vsel %vm3306_vm2, %v3141_v60, 0  ;;  %vm1500_vm6 = vcmp.eq.s32.totalorder %v1472_v8, 1  ;;  %v1563_v10 = vadd.f32 %v1562_v2, %v1561_v15 }
 0x10b   :  { %v1475_v61 = vpop.permute.xlu0 %1474  ;;  %v1578_v55 = vrot.slane %v1577_v33, 2  ;;  %v1585_v57 = vrot.slane %v1584_v40, 4  ;;  %v372_v56 = vunpack.c.l.bf16 %v356_v6  ;;  %vm1516_vm1 = vmpackc.low %vm1500_vm6, %vm1500_vm6  ;;  %vm325_vm12 = vcmp.eq.s32.totalorder %v307_v23, 1 }
 0x10c   :  { %v426_v41 = vrot.slane %v425_v5, 2  ;;  %v1532_v58 = vsel %vm1516_vm1, %v3008_v50, 0  ;;  %vm326_vm3 = vcmp.eq.s32.totalorder %v310_v20, 1  ;;  %v1572_v53 = vadd.f32 %v1571_v16, %v1570_v12  ;;  %vm341_vm2 = vmpackc.low %vm325_vm12, %vm325_vm12 }
 0x10d   :  { %v1478_v54 = vpop.permute.xlu1 %1477  ;;  %v1586_v59 = vadd.f32 %v1585_v57, %v1584_v40  ;;  %v431_v31 = vsel %vm375_vm11, %v372_v56, 0.0  ;;  %v1531_v62 = vsel %vm3315_vm4, %v2993_v34, 0  ;;  %v419_v1 = vrot.slane %v418_v26, 1  ;;  %vm342_vm0 = vmpackc.low %vm326_vm3, %vm326_vm3 }
 0x10e   :  { %v430_v19 = vsel %vm375_vm11, %v371_v52, 0.0  ;;  %v1548_v63 = vunpack.c.l.bf16 %v1532_v58  ;;  %v357_v0 = vsel %vm341_vm2, %v3146_v44, 0  ;;  %v1579_v35 = vadd.f32 %v1578_v55, %v1577_v33 }
 0x10f   :  { %v1481_v24 = vpop.permute.xlu0 %1480  ;;  %v432_v4 = vadd.f32 %v431_v31, %v430_v19  ;;  %v373_v7 = vunpack.c.l.bf16 %v357_v0  ;;  %v358_v43 = vsel %vm342_vm0, %v3148_v3, 0  ;;  %v479_v8 = vsel %vm478_vm15, %v470_v29, %v477_v42 }
 0x110   :  { %v427_v15 = vadd.f32 %v426_v41, %v425_v5  ;;  %v1547_v25 = vunpack.c.l.bf16 %v1531_v62  ;;  %v374_v49 = vunpack.c.l.bf16 %v358_v43  ;;  %v471_v30 = vunpack.c.l.b16 %v451_v18 }
 0x111   :  { %v1484_v50 = vpop.permute.xlu1 %1483  ;;  %v1627_v32 = vpack.c.bf16 %v1563_v10, %v1563_v10  ;;  %v1628_v17 = vpack.c.bf16 %v1572_v53, %v1572_v53  ;;  %v1587_v22 = vrot.slane %v1586_v59, 2  ;;  %v1592_v9 = vsel %vm375_vm11, %v1548_v63, 0.0 }
 0x112   :  { %v439_v23 = vsel %vm375_vm11, %v373_v7, 0.0  ;;  %v440_v12 = vsel %vm375_vm11, %v374_v49, 0.0  ;;  %vm1501_vm4 = vcmp.eq.s32.totalorder %v1475_v61, 1  ;;  %v420_v28 = vadd.f32 %v419_v1, %v418_v26 }
 0x113   :  { %v1487_v34 = vpop.permute.xlu0 %1486  ;;  %v1580_v14 = vrot.slane %v1579_v35, 1  ;;  %v433_v42 = vrot.slane %v432_v4, 4  ;;  %v441_v29 = vadd.f32 %v440_v12, %v439_v23  ;;  %vm1517_vm6 = vmpackc.low %vm1501_vm4, %vm1501_vm4  ;;  %v428_v11 = vrot.slane %v427_v15, 1 }
 0x114   :  { %v1591_v45 = vsel %vm375_vm11, %v1547_v25, 0.0  ;;  %v1533_v20 = vsel %vm1517_vm6, %v3076_v21, 0  ;;  %vm1502_vm1 = vcmp.eq.s32.totalorder %v1478_v54, 1  ;;  %v1588_v33 = vadd.f32 %v1587_v22, %v1586_v59 }
 0x115   :  { %v3331_v27 = vpop.permute.xlu1 %1489  ;;  %v1593_v37 = vadd.f32 %v1592_v9, %v1591_v45  ;;  %v442_v46 = vrot.slane %v441_v29, 4  ;;  %v1549_v38 = vunpack.c.l.bf16 %v1533_v20  ;;  %vm1518_vm12 = vmpackc.low %vm1502_vm1, %vm1502_vm1  ;;  %v3336_v47 = vsel %vm480_vm13, %v471_v30, %v479_v8 }
 0x116   :  { %v1648_v39 = vunpack.c.l.b16 %v1627_v32  ;;  %v1534_v61 = vsel %vm1518_vm12, %v3099_v36, 0  ;;  %vm1503_vm3 = vcmp.eq.s32.totalorder %v1481_v24, 1  ;;  %v1649_v16 = vunpack.c.l.b16 %v1628_v17 }
 0x117   :  { %v661_v2 = vpop.permute.xlu0 %660  ;;  %v452_v26 = vpack.c.bf16 %v420_v28, %v420_v28  ;;  %v434_v40 = vadd.f32 %v433_v42, %v432_v4  ;;  %v443_v5 = vadd.f32 %v442_v46, %v441_v29  ;;  %vm1519_vm2 = vmpackc.low %vm1503_vm3, %vm1503_vm3  ;;  %v1581_v21 = vadd.f32 %v1580_v14, %v1579_v35  ;;  %v3373_v14 = vld [vmem:[#allocation2] sm:$0xf]  ;;  %v3378_v42 = vld [vmem:[#allocation2 + $0x4] sm:$0xf] }
 0x118   :  { %v1550_v52 = vunpack.c.l.bf16 %v1534_v61  ;;  %v1535_v6 = vsel %vm1519_vm2, %v3120_v13, 0  ;;  %vm1504_vm0 = vcmp.eq.s32.totalorder %v1484_v50, 1  ;;  %v429_v54 = vadd.f32 %v428_v11, %v427_v15 }
 0x119   :  { %v664_v18 = vpop.permute.xlu1 %663  ;;  %v1589_v10 = vrot.slane %v1588_v33, 1  ;;  %v1594_v55 = vrot.slane %v1593_v37, 4  ;;  %v1600_v57 = vsel %vm375_vm11, %v1549_v38, 0.0  ;;  %vm1520_vm4 = vmpackc.low %vm1504_vm0, %vm1504_vm0  ;;  %v1551_v56 = vunpack.c.l.bf16 %v1535_v6 }
 0x11a   :  { %v1601_v36 = vsel %vm375_vm11, %v1550_v52, 0.0  ;;  %v1536_v41 = vsel %vm1520_vm4, %v3141_v60, 0  ;;  %vm1505_vm6 = vcmp.eq.s32.totalorder %v1487_v34, 1  ;;  %v3344_v24 = vsel %vm476_vm7, %v1649_v16, %v1648_v39 }
 0x11b   :  { %v667_v48 = vpop.permute.xlu0 %666  ;;  %v435_v53 = vrot.slane %v434_v40, 2  ;;  %v444_v13 = vrot.slane %v443_v5, 2  ;;  %v1602_v59 = vadd.f32 %v1601_v36, %v1600_v57  ;;  %vm3346_vm1 = vmpackc.low %vm1505_vm6, %vm1505_vm6  ;;  %v3350_v62 = vunpack.c.l.b16 %v452_v26 }
 0x11c   :  { %v1629_v1 = vpack.c.bf16 %v1581_v21, %v1581_v21  ;;  %v1552_v19 = vunpack.c.l.bf16 %v1536_v41  ;;  %v1537_v60 = vsel %vm3346_vm1, %v3146_v44, 0  ;;  %v453_v0 = vpack.c.bf16 %v429_v54, %v429_v54  ;;  %v3406_v54 = vld [vmem:[#allocation2 + $0xc] sm:$0xf] }
 0x11d   :  { %v670_v58 = vpop.permute.xlu1 %669  ;;  %v3355_v50 = vadd.f32 %v1589_v10, %v1588_v33  ;;  %v1595_v35 = vadd.f32 %v1594_v55, %v1593_v37  ;;  %v1603_v4 = vrot.slane %v1602_v59, 4  ;;  %v1609_v7 = vsel %vm375_vm11, %v1551_v56, 0.0 }
 0x11e   :  { %v1610_v43 = vsel %vm375_vm11, %v1552_v19, 0.0  ;;  %vm1506_vm12 = vcmp.eq.s32.totalorder %v3331_v27, 1  ;;  %vm707_vm3 = vcmp.eq.s32.totalorder %v661_v2, 1  ;;  %v436_v15 = vadd.f32 %v435_v53, %v434_v40 }
 0x11f   :  { %v673_v63 = vpop.permute.xlu0 %672  ;;  %v445_v25 = vadd.f32 %v444_v13, %v443_v5  ;;  %v1611_v49 = vadd.f32 %v1610_v43, %v1609_v7  ;;  %v1553_v34 = vunpack.c.l.bf16 %v1537_v60  ;;  %vm1522_vm2 = vmpackc.low %vm1506_vm12, %vm1506_vm12  ;;  %v3360_v44 = vunpack.c.l.b16 %v1629_v1  ;;  %v3413_v13 = vld [vmem:[#allocation2 + $0x10] sm:$0xf] }
 0x120   :  { %v1538_v30 = vsel %vm1522_vm2, %v3148_v3, 0  ;;  %vm3363_vm0 = vmpackc.low %vm707_vm3, %vm707_vm3  ;;  %vm708_vm4 = vcmp.eq.s32.totalorder %v664_v18, 1  ;;  %vm709_vm6 = vcmp.eq.s32.totalorder %v667_v48, 1  ;;  %v3367_v22 = vunpack.c.l.b16 %v453_v0  ;;  %v3397_v18 = vld [vmem:[#allocation2 + $0x8] sm:$0xf] }
 0x121   :  { %v676_v8 = vpop.permute.xlu1 %675  ;;  %v1596_v9 = vrot.slane %v1595_v35, 2  ;;  %v1604_v23 = vadd.f32 %v1603_v4, %v1602_v59  ;;  %v1612_v12 = vrot.slane %v1611_v49, 4  ;;  %vm3369_vm1 = vmpackc.low %vm708_vm4, %vm708_vm4  ;;  %v1554_v28 = vunpack.c.l.bf16 %v1538_v30 }
 0x122   :  { %v739_v3 = vsel %vm3363_vm0, %v3373_v14, 0  ;;  %v740_v29 = vsel %vm3369_vm1, %v3378_v42, 0  ;;  %vm3383_vm12 = vmpackc.low %vm709_vm6, %vm709_vm6  ;;  %vm710_vm3 = vcmp.eq.s32.totalorder %v670_v58, 1  ;;  %v1630_v20 = vpack.c.bf16 %v3355_v50, %v3355_v50 }
 0x123   :  { %v679_v17 = vpop.permute.xlu0 %678  ;;  %v437_v2 = vrot.slane %v436_v15, 1  ;;  %v446_v33 = vrot.slane %v445_v25, 1  ;;  %v1618_v37 = vsel %vm375_vm11, %v1553_v34, 0.0  ;;  %vm3392_vm2 = vmpackc.low %vm710_vm3, %vm710_vm3  ;;  %v1619_v38 = vsel %vm375_vm11, %v1554_v28, 0.0 }
 0x124   :  { %v755_v39 = vunpack.c.l.bf16 %v739_v3  ;;  %v756_v61 = vunpack.c.l.bf16 %v740_v29  ;;  %v741_v16 = vsel %vm3383_vm12, %v3397_v18, 0  ;;  %v1597_v40 = vadd.f32 %v1596_v9, %v1595_v35  ;;  %v3419_v35 = vld [vmem:[#allocation2 + $0x14] sm:$0xf]  ;;  %v3429_v9 = vld [vmem:[#allocation2 + $0x18] sm:$0xf] }
 0x125   :  { %v3387_v45 = vpop.permute.xlu1 %681  ;;  %v1605_v5 = vrot.slane %v1604_v23, 2  ;;  %v1613_v21 = vadd.f32 %v1612_v12, %v1611_v49  ;;  %v1620_v52 = vadd.f32 %v1619_v38, %v1618_v37  ;;  %v742_v10 = vsel %vm3392_vm2, %v3406_v54, 0 }
 0x126   :  { %v771_v6 = vsel %vm375_vm11, %v755_v39, 0.0  ;;  %v772_v48 = vsel %vm375_vm11, %v756_v61, 0.0  ;;  %vm711_vm0 = vcmp.eq.s32.totalorder %v673_v63, 1  ;;  %v438_v57 = vadd.f32 %v437_v2, %v436_v15 }
 0x127   :  { %v3402_v26 = vpop.permute.xlu0 %1839  ;;  %v1621_v36 = vrot.slane %v1620_v52, 4  ;;  %v773_v56 = vadd.f32 %v772_v48, %v771_v6  ;;  %v757_v41 = vunpack.c.l.bf16 %v741_v16  ;;  %vm727_vm4 = vmpackc.low %vm711_vm0, %vm711_vm0  ;;  %v447_v58 = vadd.f32 %v446_v33, %v445_v25 }
 0x128   :  { %v758_v53 = vunpack.c.l.bf16 %v742_v10  ;;  %v743_v59 = vsel %vm727_vm4, %v3413_v13, 0  ;;  %vm712_vm6 = vcmp.eq.s32.totalorder %v676_v8, 1  ;;  %v1606_v1 = vadd.f32 %v1605_v5, %v1604_v23 }
 0x129   :  { %v3411_v55 = vpop.permute.xlu1 %1842  ;;  %v1614_v19 = vrot.slane %v1613_v21, 2  ;;  %v1622_v60 = vadd.f32 %v1621_v36, %v1620_v52  ;;  %v774_v63 = vrot.slane %v773_v56, 4  ;;  %vm728_vm1 = vmpackc.low %vm712_vm6, %vm712_vm6  ;;  %v759_v50 = vunpack.c.l.bf16 %v743_v59 }
 0x12a   :  { %v781_v0 = vsel %vm375_vm11, %v758_v53, 0.0  ;;  %v744_v4 = vsel %vm728_vm1, %v3419_v35, 0  ;;  %vm713_vm12 = vcmp.eq.s32.totalorder %v679_v17, 1  ;;  %v454_v43 = vpack.c.bf16 %v438_v57, %v438_v57 }
 0x12b   :  { %v3416_v31 = vpop.permute.xlu0 %1845  ;;  %v1598_v15 = vrot.slane %v1597_v40, 1  ;;  %v1623_v8 = vrot.slane %v1622_v60, 2  ;;  %v780_v25 = vsel %vm375_vm11, %v757_v41, 0.0  ;;  %vm3425_vm3 = vmpackc.low %vm713_vm12, %vm713_vm12  ;;  %v455_v34 = vpack.c.bf16 %v447_v58, %v447_v58 }
 0x12c   :  { %v782_v30 = vadd.f32 %v781_v0, %v780_v25  ;;  %v760_v32 = vunpack.c.l.bf16 %v744_v4  ;;  %v745_v17 = vsel %vm3425_vm3, %v3429_v9, 0  ;;  %v1607_v12 = vrot.slane %v1606_v1, 1 }
 0x12d   :  { %v3422_v7 = vpop.permute.xlu1 %1848  ;;  %v1615_v27 = vadd.f32 %v1614_v19, %v1613_v21  ;;  %v775_v28 = vadd.f32 %v774_v63, %v773_v56  ;;  %v789_v3 = vsel %vm375_vm11, %v759_v50, 0.0  ;;  %v1624_v29 = vadd.f32 %v1623_v8, %v1622_v60  ;;  %v3441_v21 = vld [vmem:[#allocation2 + $0x1c] sm:$0xf] }
 0x12e   :  { %v783_v11 = vrot.slane %v782_v30, 4  ;;  %v790_v2 = vsel %vm375_vm11, %v760_v32, 0.0  ;;  %vm714_vm2 = vcmp.eq.s32.totalorder %v3387_v45, 1  ;;  %v1651_v37 = vunpack.c.l.b16 %v1630_v20 }
 0x12f   :  { %v3434_v23 = vpop.permute.xlu0 %684  ;;  %v1599_v46 = vadd.f32 %v1598_v15, %v1597_v40  ;;  %v791_v38 = vadd.f32 %v790_v2, %v789_v3  ;;  %v761_v39 = vunpack.c.l.bf16 %v745_v17  ;;  %vm730_vm0 = vmpackc.low %vm714_vm2, %vm714_vm2  ;;  %v474_v61 = vunpack.c.l.b16 %v454_v43 }
 0x130   :  { %v475_v16 = vunpack.c.l.b16 %v455_v34  ;;  %v784_v5 = vadd.f32 %v783_v11, %v782_v30  ;;  %v746_v52 = vsel %vm730_vm0, %v3441_v21, 0  ;;  %v1608_v48 = vadd.f32 %v1607_v12, %v1606_v1 }
 0x131   :  { %v3439_v33 = vpop.permute.xlu1 %687  ;;  %v1616_v10 = vrot.slane %v1615_v27, 1  ;;  %v792_v57 = vrot.slane %v791_v38, 4  ;;  %v762_v45 = vunpack.c.l.bf16 %v746_v52  ;;  %v1625_v36 = vrot.slane %v1624_v29, 1 }
 0x132   :  { %v776_v56 = vrot.slane %v775_v28, 2  ;;  %v483_v20 = vsel %vm482_vm8, %v3350_v62, %v3336_v47  ;;  %vm1887_vm4 = vcmp.eq.s32.totalorder %v3411_v55, 1  ;;  %v798_v58 = vsel %vm375_vm11, %v761_v39, 0.0 }
 0x133   :  { %v3444_v6 = vpop.permute.xlu0 %1851  ;;  %v793_v41 = vadd.f32 %v792_v57, %v791_v38  ;;  %v799_v53 = vsel %vm375_vm11, %v762_v45, 0.0  ;;  %v485_v59 = vsel %vm484_vm5, %v3367_v22, %v483_v20  ;;  %v785_v1 = vrot.slane %v784_v5, 2  ;;  %vm3464_vm1 = vmpackc.low %vm1887_vm4, %vm1887_vm4  ;;  %v2254_v22 = vld [vmem:[#allocation5 + $0x10] sm:$0xff]  }
 0x134   :  { %v800_v19 = vadd.f32 %v799_v53, %v798_v58  ;;  %v487_v60 = vsel %vm486_vm14, %v474_v61, %v485_v59  ;;  %vm1886_vm6 = vcmp.eq.s32.totalorder %v3402_v26, 1  ;;  %v1657_v47 = vsel %vm478_vm15, %v3360_v44, %v3344_v24 }
 0x135   :  { %v3450_v40 = vpop.permute.xlu1 %1854  ;;  %v1631_v62 = vpack.c.bf16 %v1599_v46, %v1599_v46  ;;  %v1617_v55 = vadd.f32 %v1616_v10, %v1615_v27  ;;  %v489_v0 = vsel %vm488_vm10, %v475_v16, %v487_v60  ;;  %v1626_v4 = vadd.f32 %v1625_v36, %v1624_v29  ;;  %vm3469_vm12 = vmpackc.low %vm1886_vm6, %vm1886_vm6 }
 0x136   :  { %v794_v43 = vrot.slane %v793_v41, 2  ;;  %v801_v15 = vrot.slane %v800_v19, 4  ;;  %v490_v8 = vpack.c.b16 %v489_v0, %v489_v0  ;;  %v1658_v26 = vsel %vm480_vm13, %v1651_v37, %v1657_v47 }
 0x137   :  { %v3458_v63 = vpop.permute.xlu0 %690  ;;  %vm1888_vm3 = vcmp.eq.s32.totalorder %v3416_v31, 1  ;;  %v1632_v24 = vpack.c.bf16 %v1608_v48, %v1608_v48  ;;  %v777_v44 = vadd.f32 %v776_v56, %v775_v28  ;;  %v786_v49 = vadd.f32 %v785_v1, %v784_v5  ;;  %v2255_v31 = vld [vmem:[#allocation5 + $0x18] sm:$0xff]   ;;  %v3507_v5 = vld [vmem:[#allocation2 + $0x20] sm:$0xf] }
 0x138   :  { %2187 = vmatmul.mubr.msk.bf16.vlgmr.msra.gmra.mrb[0].mxu1 %vm375_vm11, %v490_v8  ;;  %v1919_v34 = vsel %vm3464_vm1, %v3378_v42, 0  ;;  %vm3478_vm2 = vmpackc.low %vm1888_vm3, %vm1888_vm3  ;;  %v1652_v17 = vunpack.c.l.b16 %v1631_v62  ;;  %v1633_v12 = vpack.c.bf16 %v1617_v55, %v1617_v55  ;;  %vm1889_vm0 = vcmp.eq.s32.totalorder %v3422_v7, 1 }
 0x139   :  { %v3482_v32 = vpop.permute.xlu1 %693  ;;  %vm715_vm4 = vcmp.eq.s32.totalorder %v3434_v23, 1  ;;  %2191 = vmatpush3.bf16.msra.mxu1 %v2254_v22  ;;  %2194 = vmatprep.mubr.msk.bf16.mxu1 %vm2356_vm9, %v2355_v51  ;;  %v1634_v27 = vpack.c.bf16 %v1626_v4, %v1626_v4  ;;  %v795_v28 = vadd.f32 %v794_v43, %v793_v41  ;;  %v802_v42 = vadd.f32 %v801_v15, %v800_v19  ;;  %vm1905_vm6 = vmpackc.low %vm1889_vm0, %vm1889_vm0  ;;  %v2256_v4 = vld [vmem:[#allocation5 + $0x40] sm:$0xff]  }
 0x13a   :  { %v1918_v3 = vsel %vm3469_vm12, %v3373_v14, 0  ;;  %2192 = vmatprep.subr.bf16.mxu1 %v2355_v51  ;;  %v1935_v7 = vunpack.c.l.bf16 %v1919_v34  ;;  %v1920_v23 = vsel %vm3478_vm2, %v3397_v18, 0  ;;  %v1921_v11 = vsel %vm1905_vm6, %v3406_v54, 0  ;;  %vm3498_vm1 = vmpackc.low %vm715_vm4, %vm715_vm4  ;;  %v3512_v54 = vld [vmem:[#allocation2 + $0x24] sm:$0xf] }
 0x13b   :  { %v3491_v29 = vpop.permute.xlu0 %1857  ;;  %vm716_vm3 = vcmp.eq.s32.totalorder %v3439_v33, 1  ;;  %v1653_v37 = vunpack.c.l.b16 %v1632_v24  ;;  %v778_v14 = vrot.slane %v777_v44, 1  ;;  %v787_v46 = vrot.slane %v786_v49, 1 }
 0x13c   :  { %v1937_v38 = vunpack.c.l.bf16 %v1921_v11  ;;  %vm3503_vm12 = vmpackc.low %vm716_vm3, %vm716_vm3  ;;  %v1654_v61 = vunpack.c.l.b16 %v1633_v12  ;;  %v1934_v16 = vunpack.c.l.bf16 %v1918_v3  ;;  %v747_v18 = vsel %vm3498_vm1, %v3507_v5, 0 }
 0x13d   :  { %v748_v33 = vsel %vm3503_vm12, %v3512_v54, 0  ;;  %2193 = vmatpush3.bf16.msra.mxu1 %v2255_v31  ;;  %v1659_v52 = vsel %vm482_vm8, %v1652_v17, %v1658_v26  ;;  %v1655_v48 = vunpack.c.l.b16 %v1634_v27  ;;  %v803_v10 = vrot.slane %v802_v42, 2  ;;  %v1861_v45 = vpop.permute.xlu1 %1860 }
 0x13e   :  { %v1936_v57 = vunpack.c.l.bf16 %v1920_v23  ;;  %v796_v36 = vrot.slane %v795_v28, 1  ;;  %v1951_v56 = vsel %vm375_vm11, %v1935_v7, 0.0  ;;  %v763_v20 = vunpack.c.l.bf16 %v747_v18  ;;  %v3555_v7 = vld [vmem:[#allocation2 + $0x2c] sm:$0xf] }
 0x13f   :  { %v764_v41 = vunpack.c.l.bf16 %v748_v33  ;;  %v1660_v58 = vsel %vm484_vm5, %v1653_v37, %v1659_v52  ;;  %v779_v53 = vadd.f32 %v778_v14, %v777_v44  ;;  %v788_v59 = vadd.f32 %v787_v46, %v786_v49  ;;  %v3521_v19 = vpop.permute.xlu0 %696 }
 0x140   :  { %v1960_v1 = vsel %vm375_vm11, %v1937_v38, 0.0  ;;  %v1950_v60 = vsel %vm375_vm11, %v1934_v16, 0.0  ;;  %v1661_v62 = vsel %vm486_vm14, %v1654_v61, %v1660_v58  ;;  %vm1890_vm2 = vcmp.eq.s32.totalorder %v3444_v6, 1 }
 0x141   :  { %v808_v47 = vsel %vm375_vm11, %v764_v41, 0.0  ;;  %v804_v55 = vadd.f32 %v803_v10, %v802_v42  ;;  %v1952_v0 = vadd.f32 %v1951_v56, %v1950_v60  ;;  %v1959_v50 = vsel %vm375_vm11, %v1936_v57, 0.0  ;;  %vm3530_vm0 = vmpackc.low %vm1890_vm2, %vm1890_vm2  ;;  %v700_v6 = vpop.permute.xlu1 %699 }
 0x142   :  { %v1662_v22 = vsel %vm488_vm10, %v1655_v48, %v1661_v62  ;;  %v797_v43 = vadd.f32 %v796_v36, %v795_v28  ;;  %v1961_v15 = vadd.f32 %v1960_v1, %v1959_v50  ;;  %v807_v8 = vsel %vm375_vm11, %v763_v20, 0.0  ;;  %v3551_v28 = vld [vmem:[#allocation2 + $0x28] sm:$0xf] }
 0x143   :  { %v1663_v26 = vpack.c.b16 %v1662_v22, %v1662_v22  ;;  %v809_v25 = vadd.f32 %v808_v47, %v807_v8  ;;  %vm1891_vm4 = vcmp.eq.s32.totalorder %v3450_v40, 1  ;;  %vm717_vm6 = vcmp.eq.s32.totalorder %v3458_v63, 1  ;;  %v1864_v40 = vpop.permute.xlu0 %1863  ;;  %v2257_v63 = vld [vmem:[#allocation5 + $0x48] sm:$0xff]   ;;  %v3600_v8 = vld [vmem:[#allocation2 + $0x34] sm:$0xf] }
 0x144   :  { %v843_v44 = vpack.c.bf16 %v779_v53, %v779_v53  ;;  %v844_v49 = vpack.c.bf16 %v788_v59, %v788_v59  ;;  %vm3537_vm1 = vmpackc.low %vm1891_vm4, %vm1891_vm4  ;;  %vm718_vm3 = vcmp.eq.s32.totalorder %v3482_v32, 1  ;;  %v805_v30 = vrot.slane %v804_v55, 1 }
 0x145   :  { %2211 = vmatmul.mubr.msk.bf16.vlgmr.msra.gmra.mrb[0].mxu0 %vm375_vm11, %v1663_v26  ;;  %v1953_v17 = vrot.slane %v1952_v0, 4  ;;  %v1923_v12 = vsel %vm3537_vm1, %v3419_v35, 0  ;;  %vm733_vm12 = vmpackc.low %vm717_vm6, %vm717_vm6  ;;  %vm1892_vm2 = vcmp.eq.s32.totalorder %v3491_v29, 1  ;;  %v845_v31 = vpack.c.bf16 %v797_v43, %v797_v43  ;;  %v1867_v39 = vpop.permute.xlu1 %1866 }
 0x146   :  { %2215 = vmatpush3.bf16.msra.mxu0 %v2256_v4  ;;  %2218 = vmatprep.mubr.msk.bf16.mxu0 %vm2356_vm9, %v2355_v51  ;;  %v1962_v27 = vrot.slane %v1961_v15, 4  ;;  %v1922_v32 = vsel %vm3530_vm0, %v3413_v13, 0  ;;  %v749_v42 = vsel %vm733_vm12, %v3551_v28, 0  ;;  %vm734_vm4 = vmpackc.low %vm718_vm3, %vm718_vm3  ;;  %v810_v35 = vrot.slane %v809_v25, 4 }
 0x147   :  { %2216 = vmatprep.subr.bf16.mxu0 %v2355_v51  ;;  %v765_v3 = vunpack.c.l.bf16 %v749_v42  ;;  %v750_v23 = vsel %vm734_vm4, %v3555_v7, 0  ;;  %vm3561_vm9 = vmpackc.low %vm1892_vm2, %vm1892_vm2  ;;  %vm1893_vm0 = vcmp.eq.s32.totalorder %v1861_v45, 1  ;;  %v864_v13 = vunpack.c.l.b16 %v843_v44  ;;  %v703_v45 = vpop.permute.xlu0 %702 }
 0x148   :  { %v1939_v2 = vunpack.c.l.bf16 %v1923_v12  ;;  %v766_v37 = vunpack.c.l.bf16 %v750_v23  ;;  %vm3565_vm6 = vmpackc.low %vm1893_vm0, %vm1893_vm0  ;;  %v865_v51 = vunpack.c.l.b16 %v844_v49  ;;  %v806_v46 = vadd.f32 %v805_v30, %v804_v55 }
 0x149   :  { %v1954_v38 = vadd.f32 %v1953_v17, %v1952_v0  ;;  %v1924_v29 = vsel %vm3561_vm9, %v3429_v9, 0  ;;  %v866_v61 = vunpack.c.l.b16 %v845_v31  ;;  %v1938_v16 = vunpack.c.l.bf16 %v1922_v32  ;;  %v706_v22 = vpop.permute.xlu1 %705 }
 0x14a   :  { %2217 = vmatpush3.bf16.msra.mxu0 %v2257_v63  ;;  %v816_v18 = vsel %vm375_vm11, %v765_v3, 0.0  ;;  %v817_v33 = vsel %vm375_vm11, %v766_v37, 0.0  ;;  %v1963_v52 = vadd.f32 %v1962_v27, %v1961_v15  ;;  %v811_v48 = vadd.f32 %v810_v35, %v809_v25 }
 0x14b   :  { %v818_v10 = vadd.f32 %v817_v33, %v816_v18  ;;  %v1925_v57 = vsel %vm3565_vm6, %v3441_v21, 0  ;;  %v1969_v36 = vsel %vm375_vm11, %v1939_v2, 0.0  ;;  %v1940_v56 = vunpack.c.l.bf16 %v1924_v29  ;;  %v3585_v21 = vld [vmem:[#allocation2 + $0x30] sm:$0xf]  ;;  %v1870_v44 = vpop.permute.xlu0 %1869 }
 0x14c   :  { %v1941_v9 = vunpack.c.l.bf16 %v1925_v57  ;;  %vm719_vm1 = vcmp.eq.s32.totalorder %v3521_v19, 1  ;;  %v846_v20 = vpack.c.bf16 %v806_v46, %v806_v46  ;;  %v1955_v41 = vrot.slane %v1954_v38, 2 }
 0x14d   :  { %v819_v58 = vrot.slane %v818_v10, 4  ;;  %vm3579_vm3 = vmpackc.low %vm719_vm1, %vm719_vm1  ;;  %vm720_vm12 = vcmp.eq.s32.totalorder %v700_v6, 1  ;;  %v1968_v59 = vsel %vm375_vm11, %v1938_v16, 0.0  ;;  %vm1894_vm4 = vcmp.eq.s32.totalorder %v1864_v40, 1 }
 0x14e   :  { %v1978_v1 = vsel %vm375_vm11, %v1941_v9, 0.0  ;;  %v751_v60 = vsel %vm3579_vm3, %v3585_v21, 0  ;;  %vm3590_vm2 = vmpackc.low %vm720_vm12, %vm720_vm12  ;;  %v1964_v47 = vrot.slane %v1963_v52, 2  ;;  %v812_v62 = vrot.slane %v811_v48, 2 }
 0x14f   :  { %v1970_v55 = vadd.f32 %v1969_v36, %v1968_v59  ;;  %v820_v0 = vadd.f32 %v819_v58, %v818_v10  ;;  %vm3594_vm9 = vmpackc.low %vm1894_vm4, %vm1894_vm4  ;;  %v872_v4 = vsel %vm476_vm7, %v865_v51, %v864_v13  ;;  %v1977_v43 = vsel %vm375_vm11, %v1940_v56, 0.0  ;;  %v3618_v13 = vld [vmem:[#allocation2 + $0x38] sm:$0xf] }
 0x150   :  { %v767_v15 = vunpack.c.l.bf16 %v751_v60  ;;  %v752_v26 = vsel %vm3590_vm2, %v3600_v8, 0  ;;  %v3606_v25 = vsel %vm478_vm15, %v866_v61, %v872_v4  ;;  %v1979_v6 = vadd.f32 %v1978_v1, %v1977_v43 }
 0x151   :  { %v821_v24 = vrot.slane %v820_v0, 2  ;;  %v3608_v49 = vadd.f32 %v1955_v41, %v1954_v38  ;;  %v768_v34 = vunpack.c.l.bf16 %v752_v26  ;;  %v1926_v30 = vsel %vm3594_vm9, %v3507_v5, 0  ;;  %v1873_v5 = vpop.permute.xlu1 %1872 }
 0x152   :  { %vm1895_vm0 = vcmp.eq.s32.totalorder %v1867_v39, 1  ;;  %v3613_v17 = vunpack.c.l.b16 %v846_v20  ;;  %v1965_v12 = vadd.f32 %v1964_v47, %v1963_v52  ;;  %v813_v40 = vadd.f32 %v812_v62, %v811_v48  ;;  %v3623_v39 = vld [vmem:[#allocation2 + $0x3c] sm:$0xf] }
 0x153   :  { %v1971_v63 = vrot.slane %v1970_v55, 4  ;;  %vm1911_vm6 = vmpackc.low %vm1895_vm0, %vm1895_vm0  ;;  %v825_v31 = vsel %vm375_vm11, %v767_v15, 0.0  ;;  %v826_v27 = vsel %vm375_vm11, %v768_v34, 0.0  ;;  %vm721_vm1 = vcmp.eq.s32.totalorder %v703_v45, 1 }
 0x154   :  { %v1927_v32 = vsel %vm1911_vm6, %v3512_v54, 0  ;;  %v822_v42 = vadd.f32 %v821_v24, %v820_v0  ;;  %v1980_v35 = vrot.slane %v1979_v6, 4  ;;  %v827_v3 = vadd.f32 %v826_v27, %v825_v31  ;;  %vm737_vm3 = vmpackc.low %vm721_vm1, %vm721_vm1  ;;  %v1876_v54 = vpop.permute.xlu0 %1875 }
 0x155   :  { %v1942_v23 = vunpack.c.l.bf16 %v1926_v30  ;;  %v1943_v11 = vunpack.c.l.bf16 %v1927_v32  ;;  %v753_v2 = vsel %vm737_vm3, %v3618_v13, 0  ;;  %vm722_vm12 = vcmp.eq.s32.totalorder %v706_v22, 1  ;;  %v1879_v53 = vpop.permute.xlu1 %1878 }
 0x156   :  { %vm1896_vm2 = vcmp.eq.s32.totalorder %v1870_v44, 1  ;;  %v1957_v37 = vrot.slane %v3608_v49, 1  ;;  %v1966_v14 = vrot.slane %v1965_v12, 1  ;;  %v814_v51 = vrot.slane %v813_v40, 1  ;;  %vm738_vm4 = vmpackc.low %vm722_vm12, %vm722_vm12 }
 0x157   :  { %v828_v46 = vrot.slane %v827_v3, 4  ;;  %v1987_v38 = vsel %vm375_vm11, %v1943_v11, 0.0  ;;  %v769_v29 = vunpack.c.l.bf16 %v753_v2  ;;  %v754_v61 = vsel %vm738_vm4, %v3623_v39, 0  ;;  %vm3626_vm9 = vmpackc.low %vm1896_vm2, %vm1896_vm2 }
 0x158   :  { %vm1897_vm0 = vcmp.eq.s32.totalorder %v1873_v5, 1  ;;  %v1972_v18 = vadd.f32 %v1971_v63, %v1970_v55  ;;  %v1981_v33 = vadd.f32 %v1980_v35, %v1979_v6  ;;  %v1986_v48 = vsel %vm375_vm11, %v1942_v23, 0.0 }
 0x159   :  { %v829_v52 = vadd.f32 %v828_v46, %v827_v3  ;;  %vm3631_vm6 = vmpackc.low %vm1897_vm0, %vm1897_vm0  ;;  %v823_v57 = vrot.slane %v822_v42, 1  ;;  %v1988_v45 = vadd.f32 %v1987_v38, %v1986_v48  ;;  %v770_v36 = vunpack.c.l.bf16 %v754_v61  ;;  %v1885_v63 = vpop.permute.xlu1 %1884 }
 0x15a   :  { %v1928_v56 = vsel %vm3626_vm9, %v3551_v28, 0  ;;  %v3638_v9 = vadd.f32 %v1966_v14, %v1965_v12  ;;  %v815_v20 = vadd.f32 %v814_v51, %v813_v40  ;;  %v834_v58 = vsel %vm375_vm11, %v769_v29, 0.0  ;;  %v1882_v28 = vpop.permute.xlu0 %1881 }
 0x15b   :  { %v830_v41 = vrot.slane %v829_v52, 2  ;;  %v1989_v59 = vrot.slane %v1988_v45, 4  ;;  %v835_v1 = vsel %vm375_vm11, %v770_v36, 0.0  ;;  %v1944_v60 = vunpack.c.l.bf16 %v1928_v56 }
 0x15c   :  { %v1929_v19 = vsel %vm3631_vm6, %v3555_v7, 0  ;;  %v1973_v47 = vrot.slane %v1972_v18, 2  ;;  %v1982_v62 = vrot.slane %v1981_v33, 2  ;;  %v836_v0 = vadd.f32 %v835_v1, %v834_v58 }
 0x15d   :  { %v831_v55 = vadd.f32 %v830_v41, %v829_v52  ;;  %v824_v50 = vadd.f32 %v823_v57, %v822_v42  ;;  %v1990_v22 = vadd.f32 %v1989_v59, %v1988_v45  ;;  %v1945_v4 = vunpack.c.l.bf16 %v1929_v19 }
 0x15e   :  { %vm1898_vm1 = vcmp.eq.s32.totalorder %v1876_v54, 1  ;;  %v837_v15 = vrot.slane %v836_v0, 4  ;;  %v1995_v26 = vsel %vm375_vm11, %v1944_v60, 0.0  ;;  %vm1899_vm12 = vcmp.eq.s32.totalorder %v1879_v53, 1 }
 0x15f   :  { %v832_v43 = vrot.slane %v831_v55, 1  ;;  %vm1914_vm3 = vmpackc.low %vm1898_vm1, %vm1898_vm1  ;;  %v1991_v24 = vrot.slane %v1990_v22, 2  ;;  %v1996_v6 = vsel %vm375_vm11, %v1945_v4, 0.0  ;;  %vm1900_vm4 = vcmp.eq.s32.totalorder %v1882_v28, 1 }
 0x160   :  { %v1930_v7 = vsel %vm1914_vm3, %v3585_v21, 0  ;;  %vm1915_vm2 = vmpackc.low %vm1899_vm12, %vm1899_vm12  ;;  %v847_v44 = vpack.c.bf16 %v815_v20, %v815_v20  ;;  %v1974_v34 = vadd.f32 %v1973_v47, %v1972_v18  ;;  %v838_v30 = vadd.f32 %v837_v15, %v836_v0 }
 0x161   :  { %v1997_v12 = vadd.f32 %v1996_v6, %v1995_v26  ;;  %vm3648_vm9 = vmpackc.low %vm1900_vm4, %vm1900_vm4  ;;  %v833_v31 = vadd.f32 %v832_v43, %v831_v55  ;;  %v1946_v27 = vunpack.c.l.bf16 %v1930_v7  ;;  %v1931_v32 = vsel %vm1915_vm2, %v3600_v8, 0 }
 0x162   :  { %v1932_v42 = vsel %vm3648_vm9, %v3618_v13, 0  ;;  %v1983_v21 = vadd.f32 %v1982_v62, %v1981_v33  ;;  %v839_v35 = vrot.slane %v838_v30, 2  ;;  %v1947_v23 = vunpack.c.l.bf16 %v1931_v32 }
 0x163   :  { %v1998_v3 = vrot.slane %v1997_v12, 4  ;;  %v848_v5 = vpack.c.bf16 %v824_v50, %v824_v50  ;;  %v1992_v11 = vadd.f32 %v1991_v24, %v1990_v22  ;;  %v2004_v2 = vsel %vm375_vm11, %v1946_v27, 0.0 }
 0x164   :  { %vm1901_vm0 = vcmp.eq.s32.totalorder %v1885_v63, 1  ;;  %v840_v14 = vadd.f32 %v839_v35, %v838_v30  ;;  %v2005_v46 = vsel %vm375_vm11, %v1947_v23, 0.0  ;;  %v1948_v54 = vunpack.c.l.bf16 %v1932_v42 }
 0x165   :  { %v1999_v51 = vadd.f32 %v1998_v3, %v1997_v12  ;;  %vm1917_vm6 = vmpackc.low %vm1901_vm0, %vm1901_vm0  ;;  %v868_v8 = vunpack.c.l.b16 %v847_v44  ;;  %v849_v38 = vpack.c.bf16 %v833_v31, %v833_v31  ;;  %v2006_v29 = vadd.f32 %v2005_v46, %v2004_v2 }
 0x166   :  { %v1933_v13 = vsel %vm1917_vm6, %v3623_v39, 0  ;;  %v1975_v61 = vrot.slane %v1974_v34, 1  ;;  %v841_v16 = vrot.slane %v840_v14, 1  ;;  %v869_v52 = vunpack.c.l.b16 %v848_v5 }
 0x167   :  { %v2000_v18 = vrot.slane %v1999_v51, 2  ;;  %v1949_v33 = vunpack.c.l.bf16 %v1933_v13  ;;  %v1984_v48 = vrot.slane %v1983_v21, 1  ;;  %v1993_v10 = vrot.slane %v1992_v11, 1 }
 0x168   :  { %v2007_v57 = vrot.slane %v2006_v29, 4  ;;  %v842_v45 = vadd.f32 %v841_v16, %v840_v14  ;;  %v2013_v56 = vsel %vm375_vm11, %v1948_v54, 0.0  ;;  %v874_v41 = vsel %vm480_vm13, %v3613_v17, %v3606_v25 }
 0x169   :  { %v2001_v36 = vadd.f32 %v2000_v18, %v1999_v51  ;;  %v2014_v20 = vsel %vm375_vm11, %v1949_v33, 0.0  ;;  %v870_v58 = vunpack.c.l.b16 %v849_v38  ;;  %v1958_v59 = vadd.f32 %v1957_v37, %v3608_v49  ;;  %v2149_v33 = vld [vmem:[%s3706_s3] ss:$0 sm:$0xff]  ;;  %s2357_s3 = smov [#allocation7]  }
 0x16a   :  { %v2008_v39 = vadd.f32 %v2007_v57, %v2006_v29  ;;  %v2015_v53 = vadd.f32 %v2014_v20, %v2013_v56  ;;  %v1976_v1 = vadd.f32 %v1975_v61, %v1974_v34  ;;  %v850_v60 = vpack.c.bf16 %v842_v45, %v842_v45  ;;  %v2165_v45 = vld [vmem:[%s3707_s4] ss:$0 sm:$0xff]  ;;  %s2139_s30 = sshll.u32 %s2357_s3, 4  ;;  %s2140_s30 = int_to_ptr.vmem [resolvable:$true] %s2139_s30 }
 0x16b   :  { %v2002_v19 = vrot.slane %v2001_v36, 1  ;;  %v875_v47 = vsel %vm482_vm8, %v868_v8, %v874_v41  ;;  %v1985_v62 = vadd.f32 %v1984_v48, %v1983_v21  ;;  %v2023_v28 = vpack.c.bf16 %v3638_v9, %v3638_v9  ;;  %v2166_v20 = vld [vmem:[%s3708_s5] ss:$0 sm:$0xff]  ;;  %s2321_s7 = scalar_lea.vmem %s2140_s30, 128  ;;  %p2326_p3 = scmp.lt.s32.totalorder %s2140_s30, %s2140_s30 }
 0x16c   :  { %v2009_v55 = vrot.slane %v2008_v39, 2  ;;  %v2016_v0 = vrot.slane %v2015_v53, 4  ;;  %v876_v25 = vsel %vm484_vm5, %v869_v52, %v875_v47  ;;  %v1994_v17 = vadd.f32 %v1993_v10, %v1992_v11  ;;  %v136_v52 = vpop.permute.xlu0 %135  ;;  %p2322_p2 = scmp.ne.s32.totalorder %s2140_s30, %s2321_s7  ;;  %p2327_p4 = scmp.lt.s32.totalorder %s2321_s7, %s2321_s7 }
 0x16d   :  { %v871_v50 = vunpack.c.l.b16 %v850_v60  ;;  %v2003_v22 = vadd.f32 %v2002_v19, %v2001_v36  ;;  %v877_v49 = vsel %vm486_vm14, %v870_v58, %v876_v25  ;;  %v2022_v37 = vpack.c.bf16 %v1958_v59, %v1958_v59 }
 0x16e   :  { %v2010_v4 = vadd.f32 %v2009_v55, %v2008_v39  ;;  %v2017_v43 = vadd.f32 %v2016_v0, %v2015_v53  ;;  %v2024_v15 = vpack.c.bf16 %v1976_v1, %v1976_v1  ;;  %v2025_v24 = vpack.c.bf16 %v1985_v62, %v1985_v62  ;;  %p2328_p5 = por %p2327_p4, %p2326_p3 }
 0x16f   :  { %v878_v26 = vsel %vm488_vm10, %v871_v50, %v877_v49  ;;  %v2026_v34 = vpack.c.bf16 %v1994_v17, %v1994_v17  ;;  %v2044_v30 = vunpack.c.l.b16 %v2023_v28  ;;  %v2027_v9 = vpack.c.bf16 %v2003_v22, %v2003_v22 }
 0x170   :  { %v2011_v6 = vrot.slane %v2010_v4, 1  ;;  %v2018_v7 = vrot.slane %v2017_v43, 2  ;;  %v879_v44 = vpack.c.b16 %v878_v26, %v878_v26  ;;  %v2045_v63 = vunpack.c.l.b16 %v2024_v15  ;;  %p2329_p6 = pnand %p2328_p5, %p2322_p2 }
 0x171   :  { %v2043_v31 = vunpack.c.l.b16 %v2022_v37  ;;  %v2046_v27 = vunpack.c.l.b16 %v2025_v24  ;;  %v2047_v21 = vunpack.c.l.b16 %v2026_v34  ;;  %v2048_v3 = vunpack.c.l.b16 %v2027_v9 }
 0x172   :  { %v2012_v12 = vadd.f32 %v2011_v6, %v2010_v4  ;;  %v2019_v40 = vadd.f32 %v2018_v7, %v2017_v43  ;;  %2195 = vmatmul.mubr.msk.bf16.vlgmr.msra.gmra.mrb[0].mxu1 %vm375_vm11, %v879_v44  ;;  %v144_v48 = vmul.f32 %v2149_v33, %v136_v52 }
 0x173   :  { %v2051_v35 = vsel %vm476_vm7, %v2044_v30, %v2043_v31 }
 0x174   :  { %v2028_v32 = vpack.c.bf16 %v2012_v12, %v2012_v12  ;;  %v2020_v42 = vrot.slane %v2019_v40, 1  ;;  %v2052_v5 = vsel %vm478_vm15, %v2045_v63, %v2051_v35 }
 0x175   :  { %v2053_v2 = vsel %vm480_vm13, %v2046_v27, %v2052_v5 }
 0x176   :  { %v2021_v23 = vadd.f32 %v2020_v42, %v2019_v40  ;;  %v2049_v11 = vunpack.c.l.b16 %v2028_v32  ;;  %v2054_v51 = vsel %vm482_vm8, %v2047_v21, %v2053_v2 }
 0x177   :  { %v2055_v46 = vsel %vm484_vm5, %v2048_v3, %v2054_v51 }
 0x178   :  { %v2029_v14 = vpack.c.bf16 %v2021_v23, %v2021_v23  ;;  %v2056_v8 = vsel %vm486_vm14, %v2049_v11, %v2055_v46 }
 0x17a   :  { %v2050_v54 = vunpack.c.l.b16 %v2029_v14 }
 0x17c   :  { %v2057_v38 = vsel %vm488_vm10, %v2050_v54, %v2056_v8 }
 0x17d   :  { %v2058_v29 = vpack.c.b16 %v2057_v38, %v2057_v38 }
 0x17f   :  { %2219 = vmatmul.mubr.msk.bf16.vlgmr.msra.gmra.mrb[0].mxu0 %vm375_vm11, %v2058_v29 }
 0x245   :  { %v929_v13 = vpop.f32.mrb[0].mxu1 }
 0x246   :  { %v2196_v61 = vpop.f32.mrb[1].mxu1  ;;  %v2222_v10 = vadd.f32 %v929_v13, %v144_v48 }
 0x247   :  { %v932_v16 = vpop.f32.mrb[2].mxu1 }
 0x248   :  { %v2197_v18 = vpop.f32.mrb[3].mxu1 }
 0x252   :  { %v2108_v57 = vpop.f32.mrb[0].mxu0 }
 0x253   :  { %v2223_v36 = vadd.f32 %v2222_v10, %v2108_v57  ;;  %v2220_v56 = vpop.f32.mrb[1].mxu0 }
 0x254   :  { %v2111_v41 = vpop.f32.mrb[2].mxu0 }
 0x255   :  { %v2122_v58 = vmul.f32 %v2223_v36, %v2165_v45  ;;  %v2221_v39 = vpop.f32.mrb[3].mxu0 }
 0x257   :  { %v2130_v53 = vadd.f32 %v2166_v20, %v2122_v58 }
 0x259   :  { %2258 = vtanh.f32 %v2130_v53 }
 0x263   :  { %v2259_v59 = vpop.eup %2258 }
 0x264   :  { %2132 = vst [vmem:[#allocation7] sm:$0xff] %v2259_v59 }
 0x265   :  { %2332 = shalt.err (!%p2329_p6)
}
 0x266   :  { %s2333_s5 = scalar_lea.hbm %s3709_s6, 128 }
 0x267   :  { %p2334_p7 = scmp.ne.s32.totalorder %s3709_s6, %s2333_s5  ;;  %p2337_p8 = scmp.lt.u32.totalorder %s2333_s5, %s3709_s6 }
 0x269   :  { %p2339_p9 = pnand %p2337_p8, %p2334_p7 }
 0x26b   :  { %2342 = shalt.err (!%p2339_p9)
}
 0x26c   :  { %2142 = dma.vmem_to_hbm [thread:$0]  %s2140_s30, 128, %s3709_s6, [#allocation4]  }
 0x26d   :  { %2347 = dma.done.wait [#allocation4], 128  }
 0x26e   :  { %2348 = vsyncadd [#allocation4], 4294967168 }
 0x26f   :  { %2146 = vsyncpa [#allocation3], 1 }
 0x270   :  { %2147 = vsyncpa [#allocation6], 1 }
 0x271   :  { %2148 = vsyncpa [#allocation4], 1 }

</bundles_post_ra>
